<compile_context>
chip_gen: v6e
topology: v6e:2x2x1
jax: 0.10.0
libtpu: 0.0.40
codegen_flags: <defaults>
</compile_context>

<pallas_src>
import functools

import jax
import jax.numpy as jnp
from jax.experimental import pallas as pl
from jax.experimental.pallas import tpu as pltpu

D_IN = 2
D_OUT = 5
THRESHOLD = 1.0
LANE = 128      # vreg lane width
SUBLANE = 8     # f32 vreg sublane count


def _round_up(n, m):
    return (n + m - 1) // m * m


def _iaf(v, drive):
    """Integrate-and-fire update on a value-carried membrane. Returns (v, spikes)."""
    v = v + drive
    pos = jnp.maximum(v, 0.0)
    if THRESHOLD == 1.0:                      # static check: drop the divide entirely
        spikes = jnp.floor(pos)
        v = v - spikes
    else:
        spikes = jnp.floor(pos * (1.0 / THRESHOLD))
        v = v - spikes * THRESHOLD
    return v, spikes


def snn_kernel(x0_ref, x1_ref,
               w1_ref, b1_ref, w2_ref, b2_ref, w3_ref, b3_ref, w4_ref, b4_ref,
               out_ref, *, batch, time):
    # ---- Layer 1, hoisted out of the recurrence (stateless): K = 2, so skip
    # the MXU entirely.  Two VPU broadcast-FMAs over all T*B rows against
    # lane-dense (1, Hp) weight rows.  Frees the vector-extended slot for the
    # real layer-2..4 matmuls and removes the lane-sparse (T*B, 2) operand.
    w1 = w1_ref[...]                                      # (2, Hp)
    h1_all = (x0_ref[...] * w1[0:1, :]
              + x1_ref[...] * w1[1:2, :]
              + b1_ref[...])                              # (T*B, Hp), lane-dense

    # ---- Bias hoists: one vreg each, loaded once, reused every timestep.
    b2 = b2_ref[...]
    b3 = b3_ref[...]
    b4 = b4_ref[...]

    hp = w2_ref.shape[1]
    dp = w4_ref.shape[1]
    v1 = jnp.zeros((batch, hp), jnp.float32)
    v2 = jnp.zeros((batch, hp), jnp.float32)
    v3 = jnp.zeros((batch, hp), jnp.float32)
    v4 = jnp.zeros((batch, dp), jnp.float32)

    # ---- Time recurrence, fully unrolled at trace time (T small & static).
    # Weights w2..w4 are referenced in place per use: VMEM loads are cheap,
    # while holding three 128x128 f32 weights live as values would blow the
    # 64-vreg file.  For T >~ 16-32, switch to lax.fori_loop(..., unroll=k).
    # TODO(synk): hold w2/w3/w4 in the MXU across the loop via
    # pltpu.matmul_push_rhs / matmul_acc_lhs / matmul_pop to avoid re-pushing
    # 128-row weights every step (kept on jnp.dot here for portability).
    for t in range(time):
        rows = slice(t * batch, (t + 1) * batch)          # static, sublane-aligned
        v1, s1 = _iaf(v1, h1_all[rows, :])
        v2, s2 = _iaf(v2, jnp.dot(s1, w2_ref[...],
                                  preferred_element_type=jnp.float32) + b2)
        v3, s3 = _iaf(v3, jnp.dot(s2, w3_ref[...],
                                  preferred_element_type=jnp.float32) + b3)
        v4, s4 = _iaf(v4, jnp.dot(s3, w4_ref[...],
                                  preferred_element_type=jnp.float32) + b4)
        out_ref[rows, :] = s4       # full (8, 128) tile: unmasked, dense store


@functools.partial(jax.jit, static_argnames=("hidden_dim",))
def snn_forward(x, params, hidden_dim):
    B, T, d_in = x.shape
    assert d_in == D_IN
    w1, b1, w2, b2, w3, b3, w4, b4 = params
    H = hidden_dim
    Bp = _round_up(B, SUBLANE)
    Hp = _round_up(H, LANE)
    Dp = _round_up(D_OUT, LANE)

    # Time-major, batch padded to the sublane tile, batch-flattened.  The two
    # input features are passed as separate (T*Bp, 1) columns so the kernel's
    # layer-1 broadcast-FMAs need no lane-offset slicing.
    x_t = jnp.swapaxes(x, 0, 1).astype(jnp.float32)           # (T, B, 2)
    x_t = jnp.pad(x_t, ((0, 0), (0, Bp - B), (0, 0)))         # (T, Bp, 2)
    x_t = x_t.reshape(T * Bp, D_IN)
    x0 = x_t[:, 0:1]
    x1 = x_t[:, 1:2]

    # Zero-pad hidden/output features to the 128-lane vreg width.  Padded
    # lanes carry zero weight/bias -> zero drive -> floor(0) = 0 spikes, so
    # results are exactly unchanged; they (and the padded batch rows, which
    # evolve independently) are sliced off below.
    f32 = jnp.float32
    w1p = jnp.pad(w1, ((0, 0), (0, Hp - H))).astype(f32)
    b1p = jnp.pad(b1, ((0, 0), (0, Hp - H))).astype(f32)
    w2p = jnp.pad(w2, ((0, Hp - H), (0, Hp - H))).astype(f32)
    b2p = jnp.pad(b2, ((0, 0), (0, Hp - H))).astype(f32)
    w3p = jnp.pad(w3, ((0, Hp - H), (0, Hp - H))).astype(f32)
    b3p = jnp.pad(b3, ((0, 0), (0, Hp - H))).astype(f32)
    w4p = jnp.pad(w4, ((0, Hp - H), (0, Dp - D_OUT))).astype(f32)
    b4p = jnp.pad(b4, ((0, 0), (0, Dp - D_OUT))).astype(f32)

    operands = (x0, x1, w1p, b1p, w2p, b2p, w3p, b3p, w4p, b4p)

    # VMEM budget guard: no grid -> everything resident exactly once (no
    # double-buffering).  Only raise the scoped-VMEM limit when the footprint
    # actually approaches the smallest per-chip default (16 MiB on v5e); for
    # much larger H, tile over a time-block grid axis instead.
    vmem_need = sum(a.size * a.dtype.itemsize for a in operands) + T * Bp * Dp * 4
    compiler_params = None
    if vmem_need > 12 * 2**20:
        compiler_params = pltpu.CompilerParams(
            vmem_limit_bytes=min(int(vmem_need * 2), 100 * 2**20))

    vmem = pl.BlockSpec(memory_space=pltpu.MemorySpace.VMEM)
    out_flat = pl.pallas_call(
        functools.partial(snn_kernel, batch=Bp, time=T),
        out_shape=jax.ShapeDtypeStruct((T * Bp, Dp), jnp.float32),
        in_specs=[vmem] * len(operands),
        out_specs=vmem,
        compiler_params=compiler_params,
    )(*operands)

    out = out_flat.reshape(T, Bp, Dp)[:, :B, :D_OUT]          # drop pad rows/lanes
    return jnp.swapaxes(out, 0, 1)                            # (B, T, D_OUT)


def init_params(key, hidden_dim):
    """Deterministic uniform init, PyTorch-Linear-style bounds."""
    H = hidden_dim
    shapes = [(D_IN, H), (1, H), (H, H), (1, H), (H, H), (1, H), (H, D_OUT), (1, D_OUT)]
    fan_ins = [D_IN, D_IN, H, H, H, H, H, H]
    keys = jax.random.split(key, len(shapes))
    params = []
    for k, shp, fi in zip(keys, shapes, fan_ins):
        bound = 1.0 / jnp.sqrt(jnp.float32(fi))
        params.append(jax.random.uniform(k, shp, jnp.float32, -bound, bound))
    return tuple(params)


def snn_reference(x, params):
    """Pure-JAX reference (lax.scan over time) for correctness check."""
    w1, b1, w2, b2, w3, b3, w4, b4 = params
    B = x.shape[0]
    H = w1.shape[1]

    def iaf(v, drive):
        v = v + drive
        s = jnp.floor(jnp.maximum(v, 0.0) / THRESHOLD)
        return v - s * THRESHOLD, s

    def step(carry, xt):
        v1, v2, v3, v4 = carry
        v1, s1 = iaf(v1, xt @ w1 + b1)
        v2, s2 = iaf(v2, s1 @ w2 + b2)
        v3, s3 = iaf(v3, s2 @ w3 + b3)
        v4, s4 = iaf(v4, s3 @ w4 + b4)
        return (v1, v2, v3, v4), s4

    init = (jnp.zeros((B, H)), jnp.zeros((B, H)), jnp.zeros((B, H)),
            jnp.zeros((B, D_OUT)))
    _, ys = jax.lax.scan(step, init, jnp.swapaxes(x, 0, 1))   # scan over T
    return jnp.swapaxes(ys, 0, 1)                             # (B, T, D_OUT)


if __name__ == "__main__":
    B, T, H = 4, 8, 32   # batch, time steps, hidden_dim

    key = jax.random.PRNGKey(0)
    k_x, k_p = jax.random.split(key)
    # Poisson-like positive input drive so the network actually spikes.
    x = jax.random.uniform(k_x, (B, T, D_IN), jnp.float32, 0.0, 2.0)
    params = init_params(k_p, H)

    out = snn_forward(x, params, hidden_dim=H)
    out = jax.block_until_ready(out)

    ref = snn_reference(x, params)
    assert out.shape == (B, T, D_OUT), out.shape
    assert jnp.max(jnp.abs(out - ref)) < 1e-3, "mismatch vs. pure-JAX reference"

    print("KERNEL_OK")
</pallas_src>

<mosaic_0001>
module attributes {stable_mosaic.version = 11 : i64} {
  func.func @snn_kernel(%arg0: memref<64x1xf32, #tpu.memory_space<vmem>>, %arg1: memref<64x1xf32, #tpu.memory_space<vmem>>, %arg2: memref<2x128xf32, #tpu.memory_space<vmem>>, %arg3: memref<1x128xf32, #tpu.memory_space<vmem>>, %arg4: memref<128x128xf32, #tpu.memory_space<vmem>>, %arg5: memref<1x128xf32, #tpu.memory_space<vmem>>, %arg6: memref<128x128xf32, #tpu.memory_space<vmem>>, %arg7: memref<1x128xf32, #tpu.memory_space<vmem>>, %arg8: memref<128x128xf32, #tpu.memory_space<vmem>>, %arg9: memref<1x128xf32, #tpu.memory_space<vmem>>, %arg10: memref<64x128xf32, #tpu.memory_space<vmem>>) attributes {dimension_semantics = [], scalar_prefetch = 0 : i64, scratch_operands = 0 : i64, tpu.core_type = #tpu.core_type<tc>} {
    %c0 = arith.constant 0 : index
    %c0_0 = arith.constant 0 : index
    %0 = vector.load %arg2[%c0, %c0_0] : memref<2x128xf32, #tpu.memory_space<vmem>>, vector<2x128xf32>
    %c0_1 = arith.constant 0 : index
    %c0_2 = arith.constant 0 : index
    %1 = vector.load %arg0[%c0_1, %c0_2] : memref<64x1xf32, #tpu.memory_space<vmem>>, vector<64x1xf32>
    %2 = vector.extract_strided_slice %0 {offsets = [0, 0], sizes = [1, 128], strides = [1, 1]} : vector<2x128xf32> to vector<1x128xf32>
    %3 = vector.broadcast %1 : vector<64x1xf32> to vector<64x128xf32>
    %4 = vector.broadcast %2 : vector<1x128xf32> to vector<64x128xf32>
    %5 = arith.mulf %3, %4 : vector<64x128xf32>
    %c0_3 = arith.constant 0 : index
    %c0_4 = arith.constant 0 : index
    %6 = vector.load %arg1[%c0_3, %c0_4] : memref<64x1xf32, #tpu.memory_space<vmem>>, vector<64x1xf32>
    %7 = vector.extract_strided_slice %0 {offsets = [1, 0], sizes = [1, 128], strides = [1, 1]} : vector<2x128xf32> to vector<1x128xf32>
    %8 = vector.broadcast %6 : vector<64x1xf32> to vector<64x128xf32>
    %9 = vector.broadcast %7 : vector<1x128xf32> to vector<64x128xf32>
    %10 = arith.mulf %8, %9 : vector<64x128xf32>
    %11 = arith.addf %5, %10 : vector<64x128xf32>
    %c0_5 = arith.constant 0 : index
    %c0_6 = arith.constant 0 : index
    %12 = vector.load %arg3[%c0_5, %c0_6] : memref<1x128xf32, #tpu.memory_space<vmem>>, vector<1x128xf32>
    %13 = vector.broadcast %12 : vector<1x128xf32> to vector<64x128xf32>
    %14 = arith.addf %11, %13 : vector<64x128xf32>
    %c0_7 = arith.constant 0 : index
    %c0_8 = arith.constant 0 : index
    %15 = vector.load %arg5[%c0_7, %c0_8] : memref<1x128xf32, #tpu.memory_space<vmem>>, vector<1x128xf32>
    %c0_9 = arith.constant 0 : index
    %c0_10 = arith.constant 0 : index
    %16 = vector.load %arg7[%c0_9, %c0_10] : memref<1x128xf32, #tpu.memory_space<vmem>>, vector<1x128xf32>
    %c0_11 = arith.constant 0 : index
    %c0_12 = arith.constant 0 : index
    %17 = vector.load %arg9[%c0_11, %c0_12] : memref<1x128xf32, #tpu.memory_space<vmem>>, vector<1x128xf32>
    %cst = arith.constant 0.000000e+00 : f32
    %18 = vector.broadcast %cst : f32 to vector<8x128xf32>
    %cst_13 = arith.constant 0.000000e+00 : f32
    %19 = vector.broadcast %cst_13 : f32 to vector<8x128xf32>
    %cst_14 = arith.constant 0.000000e+00 : f32
    %20 = vector.broadcast %cst_14 : f32 to vector<8x128xf32>
    %cst_15 = arith.constant 0.000000e+00 : f32
    %21 = vector.broadcast %cst_15 : f32 to vector<8x128xf32>
    %22 = vector.extract_strided_slice %14 {offsets = [0, 0], sizes = [8, 128], strides = [1, 1]} : vector<64x128xf32> to vector<8x128xf32>
    %23 = arith.addf %18, %22 : vector<8x128xf32>
    %cst_16 = arith.constant 0.000000e+00 : f32
    %24 = vector.broadcast %cst_16 : f32 to vector<8x128xf32>
    %25 = arith.maximumf %23, %24 : vector<8x128xf32>
    %26 = math.floor %25 : vector<8x128xf32>
    %27 = arith.subf %23, %26 : vector<8x128xf32>
    %c0_17 = arith.constant 0 : index
    %c0_18 = arith.constant 0 : index
    %28 = vector.load %arg4[%c0_17, %c0_18] : memref<128x128xf32, #tpu.memory_space<vmem>>, vector<128x128xf32>
    %cst_19 = arith.constant dense<0.000000e+00> : vector<8x128xf32>
    %29 = tpu.matmul %26, %28, %cst_19 {dimension_numbers = #tpu.dot_dimension_numbers<[1], [0], [0], [1], [0, 0, 1, 1], [], []>} : vector<8x128xf32>, vector<128x128xf32>, vector<8x128xf32> -> vector<8x128xf32>
    %30 = vector.broadcast %15 : vector<1x128xf32> to vector<8x128xf32>
    %31 = arith.addf %29, %30 : vector<8x128xf32>
    %32 = arith.addf %19, %31 : vector<8x128xf32>
    %cst_20 = arith.constant 0.000000e+00 : f32
    %33 = vector.broadcast %cst_20 : f32 to vector<8x128xf32>
    %34 = arith.maximumf %32, %33 : vector<8x128xf32>
    %35 = math.floor %34 : vector<8x128xf32>
    %36 = arith.subf %32, %35 : vector<8x128xf32>
    %c0_21 = arith.constant 0 : index
    %c0_22 = arith.constant 0 : index
    %37 = vector.load %arg6[%c0_21, %c0_22] : memref<128x128xf32, #tpu.memory_space<vmem>>, vector<128x128xf32>
    %cst_23 = arith.constant dense<0.000000e+00> : vector<8x128xf32>
    %38 = tpu.matmul %35, %37, %cst_23 {dimension_numbers = #tpu.dot_dimension_numbers<[1], [0], [0], [1], [0, 0, 1, 1], [], []>} : vector<8x128xf32>, vector<128x128xf32>, vector<8x128xf32> -> vector<8x128xf32>
    %39 = vector.broadcast %16 : vector<1x128xf32> to vector<8x128xf32>
    %40 = arith.addf %38, %39 : vector<8x128xf32>
    %41 = arith.addf %20, %40 : vector<8x128xf32>
    %cst_24 = arith.constant 0.000000e+00 : f32
    %42 = vector.broadcast %cst_24 : f32 to vector<8x128xf32>
    %43 = arith.maximumf %41, %42 : vector<8x128xf32>
    %44 = math.floor %43 : vector<8x128xf32>
    %45 = arith.subf %41, %44 : vector<8x128xf32>
    %c0_25 = arith.constant 0 : index
    %c0_26 = arith.constant 0 : index
    %46 = vector.load %arg8[%c0_25, %c0_26] : memref<128x128xf32, #tpu.memory_space<vmem>>, vector<128x128xf32>
    %cst_27 = arith.constant dense<0.000000e+00> : vector<8x128xf32>
    %47 = tpu.matmul %44, %46, %cst_27 {dimension_numbers = #tpu.dot_dimension_numbers<[1], [0], [0], [1], [0, 0, 1, 1], [], []>} : vector<8x128xf32>, vector<128x128xf32>, vector<8x128xf32> -> vector<8x128xf32>
    %48 = vector.broadcast %17 : vector<1x128xf32> to vector<8x128xf32>
    %49 = arith.addf %47, %48 : vector<8x128xf32>
    %50 = arith.addf %21, %49 : vector<8x128xf32>
    %cst_28 = arith.constant 0.000000e+00 : f32
    %51 = vector.broadcast %cst_28 : f32 to vector<8x128xf32>
    %52 = arith.maximumf %50, %51 : vector<8x128xf32>
    %53 = math.floor %52 : vector<8x128xf32>
    %54 = arith.subf %50, %53 : vector<8x128xf32>
    %c0_29 = arith.constant 0 : index
    %c0_30 = arith.constant 0 : index
    %55 = vector.load %arg10[%c0_29, %c0_30] : memref<64x128xf32, #tpu.memory_space<vmem>>, vector<8x128xf32>
    tpu.vector_store %arg10[%c0_29, %c0_30], %53 {strides = array<i32>} : memref<64x128xf32, #tpu.memory_space<vmem>>, vector<8x128xf32>,
    %56 = vector.extract_strided_slice %14 {offsets = [8, 0], sizes = [8, 128], strides = [1, 1]} : vector<64x128xf32> to vector<8x128xf32>
    %57 = arith.addf %27, %56 : vector<8x128xf32>
    %cst_31 = arith.constant 0.000000e+00 : f32
    %58 = vector.broadcast %cst_31 : f32 to vector<8x128xf32>
    %59 = arith.maximumf %57, %58 : vector<8x128xf32>
    %60 = math.floor %59 : vector<8x128xf32>
    %61 = arith.subf %57, %60 : vector<8x128xf32>
    %c0_32 = arith.constant 0 : index
    %c0_33 = arith.constant 0 : index
    %62 = vector.load %arg4[%c0_32, %c0_33] : memref<128x128xf32, #tpu.memory_space<vmem>>, vector<128x128xf32>
    %cst_34 = arith.constant dense<0.000000e+00> : vector<8x128xf32>
    %63 = tpu.matmul %60, %62, %cst_34 {dimension_numbers = #tpu.dot_dimension_numbers<[1], [0], [0], [1], [0, 0, 1, 1], [], []>} : vector<8x128xf32>, vector<128x128xf32>, vector<8x128xf32> -> vector<8x128xf32>
    %64 = vector.broadcast %15 : vector<1x128xf32> to vector<8x128xf32>
    %65 = arith.addf %63, %64 : vector<8x128xf32>
    %66 = arith.addf %36, %65 : vector<8x128xf32>
    %cst_35 = arith.constant 0.000000e+00 : f32
    %67 = vector.broadcast %cst_35 : f32 to vector<8x128xf32>
    %68 = arith.maximumf %66, %67 : vector<8x128xf32>
    %69 = math.floor %68 : vector<8x128xf32>
    %70 = arith.subf %66, %69 : vector<8x128xf32>
    %c0_36 = arith.constant 0 : index
    %c0_37 = arith.constant 0 : index
    %71 = vector.load %arg6[%c0_36, %c0_37] : memref<128x128xf32, #tpu.memory_space<vmem>>, vector<128x128xf32>
    %cst_38 = arith.constant dense<0.000000e+00> : vector<8x128xf32>
    %72 = tpu.matmul %69, %71, %cst_38 {dimension_numbers = #tpu.dot_dimension_numbers<[1], [0], [0], [1], [0, 0, 1, 1], [], []>} : vector<8x128xf32>, vector<128x128xf32>, vector<8x128xf32> -> vector<8x128xf32>
    %73 = vector.broadcast %16 : vector<1x128xf32> to vector<8x128xf32>
    %74 = arith.addf %72, %73 : vector<8x128xf32>
    %75 = arith.addf %45, %74 : vector<8x128xf32>
    %cst_39 = arith.constant 0.000000e+00 : f32
    %76 = vector.broadcast %cst_39 : f32 to vector<8x128xf32>
    %77 = arith.maximumf %75, %76 : vector<8x128xf32>
    %78 = math.floor %77 : vector<8x128xf32>
    %79 = arith.subf %75, %78 : vector<8x128xf32>
    %c0_40 = arith.constant 0 : index
    %c0_41 = arith.constant 0 : index
    %80 = vector.load %arg8[%c0_40, %c0_41] : memref<128x128xf32, #tpu.memory_space<vmem>>, vector<128x128xf32>
    %cst_42 = arith.constant dense<0.000000e+00> : vector<8x128xf32>
    %81 = tpu.matmul %78, %80, %cst_42 {dimension_numbers = #tpu.dot_dimension_numbers<[1], [0], [0], [1], [0, 0, 1, 1], [], []>} : vector<8x128xf32>, vector<128x128xf32>, vector<8x128xf32> -> vector<8x128xf32>
    %82 = vector.broadcast %17 : vector<1x128xf32> to vector<8x128xf32>
    %83 = arith.addf %81, %82 : vector<8x128xf32>
    %84 = arith.addf %54, %83 : vector<8x128xf32>
    %cst_43 = arith.constant 0.000000e+00 : f32
    %85 = vector.broadcast %cst_43 : f32 to vector<8x128xf32>
    %86 = arith.maximumf %84, %85 : vector<8x128xf32>
    %87 = math.floor %86 : vector<8x128xf32>
    %88 = arith.subf %84, %87 : vector<8x128xf32>
    %c8 = arith.constant 8 : index
    %c0_44 = arith.constant 0 : index
    %89 = vector.load %arg10[%c8, %c0_44] : memref<64x128xf32, #tpu.memory_space<vmem>>, vector<8x128xf32>
    tpu.vector_store %arg10[%c8, %c0_44], %87 {strides = array<i32>} : memref<64x128xf32, #tpu.memory_space<vmem>>, vector<8x128xf32>,
    %90 = vector.extract_strided_slice %14 {offsets = [16, 0], sizes = [8, 128], strides = [1, 1]} : vector<64x128xf32> to vector<8x128xf32>
    %91 = arith.addf %61, %90 : vector<8x128xf32>
    %cst_45 = arith.constant 0.000000e+00 : f32
    %92 = vector.broadcast %cst_45 : f32 to vector<8x128xf32>
    %93 = arith.maximumf %91, %92 : vector<8x128xf32>
    %94 = math.floor %93 : vector<8x128xf32>
    %95 = arith.subf %91, %94 : vector<8x128xf32>
    %c0_46 = arith.constant 0 : index
    %c0_47 = arith.constant 0 : index
    %96 = vector.load %arg4[%c0_46, %c0_47] : memref<128x128xf32, #tpu.memory_space<vmem>>, vector<128x128xf32>
    %cst_48 = arith.constant dense<0.000000e+00> : vector<8x128xf32>
    %97 = tpu.matmul %94, %96, %cst_48 {dimension_numbers = #tpu.dot_dimension_numbers<[1], [0], [0], [1], [0, 0, 1, 1], [], []>} : vector<8x128xf32>, vector<128x128xf32>, vector<8x128xf32> -> vector<8x128xf32>
    %98 = vector.broadcast %15 : vector<1x128xf32> to vector<8x128xf32>
    %99 = arith.addf %97, %98 : vector<8x128xf32>
    %100 = arith.addf %70, %99 : vector<8x128xf32>
    %cst_49 = arith.constant 0.000000e+00 : f32
    %101 = vector.broadcast %cst_49 : f32 to vector<8x128xf32>
    %102 = arith.maximumf %100, %101 : vector<8x128xf32>
    %103 = math.floor %102 : vector<8x128xf32>
    %104 = arith.subf %100, %103 : vector<8x128xf32>
    %c0_50 = arith.constant 0 : index
    %c0_51 = arith.constant 0 : index
    %105 = vector.load %arg6[%c0_50, %c0_51] : memref<128x128xf32, #tpu.memory_space<vmem>>, vector<128x128xf32>
    %cst_52 = arith.constant dense<0.000000e+00> : vector<8x128xf32>
    %106 = tpu.matmul %103, %105, %cst_52 {dimension_numbers = #tpu.dot_dimension_numbers<[1], [0], [0], [1], [0, 0, 1, 1], [], []>} : vector<8x128xf32>, vector<128x128xf32>, vector<8x128xf32> -> vector<8x128xf32>
    %107 = vector.broadcast %16 : vector<1x128xf32> to vector<8x128xf32>
    %108 = arith.addf %106, %107 : vector<8x128xf32>
    %109 = arith.addf %79, %108 : vector<8x128xf32>
    %cst_53 = arith.constant 0.000000e+00 : f32
    %110 = vector.broadcast %cst_53 : f32 to vector<8x128xf32>
    %111 = arith.maximumf %109, %110 : vector<8x128xf32>
    %112 = math.floor %111 : vector<8x128xf32>
    %113 = arith.subf %109, %112 : vector<8x128xf32>
    %c0_54 = arith.constant 0 : index
    %c0_55 = arith.constant 0 : index
    %114 = vector.load %arg8[%c0_54, %c0_55] : memref<128x128xf32, #tpu.memory_space<vmem>>, vector<128x128xf32>
    %cst_56 = arith.constant dense<0.000000e+00> : vector<8x128xf32>
    %115 = tpu.matmul %112, %114, %cst_56 {dimension_numbers = #tpu.dot_dimension_numbers<[1], [0], [0], [1], [0, 0, 1, 1], [], []>} : vector<8x128xf32>, vector<128x128xf32>, vector<8x128xf32> -> vector<8x128xf32>
    %116 = vector.broadcast %17 : vector<1x128xf32> to vector<8x128xf32>
    %117 = arith.addf %115, %116 : vector<8x128xf32>
    %118 = arith.addf %88, %117 : vector<8x128xf32>
    %cst_57 = arith.constant 0.000000e+00 : f32
    %119 = vector.broadcast %cst_57 : f32 to vector<8x128xf32>
    %120 = arith.maximumf %118, %119 : vector<8x128xf32>
    %121 = math.floor %120 : vector<8x128xf32>
    %122 = arith.subf %118, %121 : vector<8x128xf32>
    %c16 = arith.constant 16 : index
    %c0_58 = arith.constant 0 : index
    %123 = vector.load %arg10[%c16, %c0_58] : memref<64x128xf32, #tpu.memory_space<vmem>>, vector<8x128xf32>
    tpu.vector_store %arg10[%c16, %c0_58], %121 {strides = array<i32>} : memref<64x128xf32, #tpu.memory_space<vmem>>, vector<8x128xf32>,
    %124 = vector.extract_strided_slice %14 {offsets = [24, 0], sizes = [8, 128], strides = [1, 1]} : vector<64x128xf32> to vector<8x128xf32>
    %125 = arith.addf %95, %124 : vector<8x128xf32>
    %cst_59 = arith.constant 0.000000e+00 : f32
    %126 = vector.broadcast %cst_59 : f32 to vector<8x128xf32>
    %127 = arith.maximumf %125, %126 : vector<8x128xf32>
    %128 = math.floor %127 : vector<8x128xf32>
    %129 = arith.subf %125, %128 : vector<8x128xf32>
    %c0_60 = arith.constant 0 : index
    %c0_61 = arith.constant 0 : index
    %130 = vector.load %arg4[%c0_60, %c0_61] : memref<128x128xf32, #tpu.memory_space<vmem>>, vector<128x128xf32>
    %cst_62 = arith.constant dense<0.000000e+00> : vector<8x128xf32>
    %131 = tpu.matmul %128, %130, %cst_62 {dimension_numbers = #tpu.dot_dimension_numbers<[1], [0], [0], [1], [0, 0, 1, 1], [], []>} : vector<8x128xf32>, vector<128x128xf32>, vector<8x128xf32> -> vector<8x128xf32>
    %132 = vector.broadcast %15 : vector<1x128xf32> to vector<8x128xf32>
    %133 = arith.addf %131, %132 : vector<8x128xf32>
    %134 = arith.addf %104, %133 : vector<8x128xf32>
    %cst_63 = arith.constant 0.000000e+00 : f32
    %135 = vector.broadcast %cst_63 : f32 to vector<8x128xf32>
    %136 = arith.maximumf %134, %135 : vector<8x128xf32>
    %137 = math.floor %136 : vector<8x128xf32>
    %138 = arith.subf %134, %137 : vector<8x128xf32>
    %c0_64 = arith.constant 0 : index
    %c0_65 = arith.constant 0 : index
    %139 = vector.load %arg6[%c0_64, %c0_65] : memref<128x128xf32, #tpu.memory_space<vmem>>, vector<128x128xf32>
    %cst_66 = arith.constant dense<0.000000e+00> : vector<8x128xf32>
    %140 = tpu.matmul %137, %139, %cst_66 {dimension_numbers = #tpu.dot_dimension_numbers<[1], [0], [0], [1], [0, 0, 1, 1], [], []>} : vector<8x128xf32>, vector<128x128xf32>, vector<8x128xf32> -> vector<8x128xf32>
    %141 = vector.broadcast %16 : vector<1x128xf32> to vector<8x128xf32>
    %142 = arith.addf %140, %141 : vector<8x128xf32>
    %143 = arith.addf %113, %142 : vector<8x128xf32>
    %cst_67 = arith.constant 0.000000e+00 : f32
    %144 = vector.broadcast %cst_67 : f32 to vector<8x128xf32>
    %145 = arith.maximumf %143, %144 : vector<8x128xf32>
    %146 = math.floor %145 : vector<8x128xf32>
    %147 = arith.subf %143, %146 : vector<8x128xf32>
    %c0_68 = arith.constant 0 : index
    %c0_69 = arith.constant 0 : index
    %148 = vector.load %arg8[%c0_68, %c0_69] : memref<128x128xf32, #tpu.memory_space<vmem>>, vector<128x128xf32>
    %cst_70 = arith.constant dense<0.000000e+00> : vector<8x128xf32>
    %149 = tpu.matmul %146, %148, %cst_70 {dimension_numbers = #tpu.dot_dimension_numbers<[1], [0], [0], [1], [0, 0, 1, 1], [], []>} : vector<8x128xf32>, vector<128x128xf32>, vector<8x128xf32> -> vector<8x128xf32>
    %150 = vector.broadcast %17 : vector<1x128xf32> to vector<8x128xf32>
    %151 = arith.addf %149, %150 : vector<8x128xf32>
    %152 = arith.addf %122, %151 : vector<8x128xf32>
    %cst_71 = arith.constant 0.000000e+00 : f32
    %153 = vector.broadcast %cst_71 : f32 to vector<8x128xf32>
    %154 = arith.maximumf %152, %153 : vector<8x128xf32>
    %155 = math.floor %154 : vector<8x128xf32>
    %156 = arith.subf %152, %155 : vector<8x128xf32>
    %c24 = arith.constant 24 : index
    %c0_72 = arith.constant 0 : index
    %157 = vector.load %arg10[%c24, %c0_72] : memref<64x128xf32, #tpu.memory_space<vmem>>, vector<8x128xf32>
    tpu.vector_store %arg10[%c24, %c0_72], %155 {strides = array<i32>} : memref<64x128xf32, #tpu.memory_space<vmem>>, vector<8x128xf32>,
    %158 = vector.extract_strided_slice %14 {offsets = [32, 0], sizes = [8, 128], strides = [1, 1]} : vector<64x128xf32> to vector<8x128xf32>
    %159 = arith.addf %129, %158 : vector<8x128xf32>
    %cst_73 = arith.constant 0.000000e+00 : f32
    %160 = vector.broadcast %cst_73 : f32 to vector<8x128xf32>
    %161 = arith.maximumf %159, %160 : vector<8x128xf32>
    %162 = math.floor %161 : vector<8x128xf32>
    %163 = arith.subf %159, %162 : vector<8x128xf32>
    %c0_74 = arith.constant 0 : index
    %c0_75 = arith.constant 0 : index
    %164 = vector.load %arg4[%c0_74, %c0_75] : memref<128x128xf32, #tpu.memory_space<vmem>>, vector<128x128xf32>
    %cst_76 = arith.constant dense<0.000000e+00> : vector<8x128xf32>
    %165 = tpu.matmul %162, %164, %cst_76 {dimension_numbers = #tpu.dot_dimension_numbers<[1], [0], [0], [1], [0, 0, 1, 1], [], []>} : vector<8x128xf32>, vector<128x128xf32>, vector<8x128xf32> -> vector<8x128xf32>
    %166 = vector.broadcast %15 : vector<1x128xf32> to vector<8x128xf32>
    %167 = arith.addf %165, %166 : vector<8x128xf32>
    %168 = arith.addf %138, %167 : vector<8x128xf32>
    %cst_77 = arith.constant 0.000000e+00 : f32
    %169 = vector.broadcast %cst_77 : f32 to vector<8x128xf32>
    %170 = arith.maximumf %168, %169 : vector<8x128xf32>
    %171 = math.floor %170 : vector<8x128xf32>
    %172 = arith.subf %168, %171 : vector<8x128xf32>
    %c0_78 = arith.constant 0 : index
    %c0_79 = arith.constant 0 : index
    %173 = vector.load %arg6[%c0_78, %c0_79] : memref<128x128xf32, #tpu.memory_space<vmem>>, vector<128x128xf32>
    %cst_80 = arith.constant dense<0.000000e+00> : vector<8x128xf32>
    %174 = tpu.matmul %171, %173, %cst_80 {dimension_numbers = #tpu.dot_dimension_numbers<[1], [0], [0], [1], [0, 0, 1, 1], [], []>} : vector<8x128xf32>, vector<128x128xf32>, vector<8x128xf32> -> vector<8x128xf32>
    %175 = vector.broadcast %16 : vector<1x128xf32> to vector<8x128xf32>
    %176 = arith.addf %174, %175 : vector<8x128xf32>
    %177 = arith.addf %147, %176 : vector<8x128xf32>
    %cst_81 = arith.constant 0.000000e+00 : f32
    %178 = vector.broadcast %cst_81 : f32 to vector<8x128xf32>
    %179 = arith.maximumf %177, %178 : vector<8x128xf32>
    %180 = math.floor %179 : vector<8x128xf32>
    %181 = arith.subf %177, %180 : vector<8x128xf32>
    %c0_82 = arith.constant 0 : index
    %c0_83 = arith.constant 0 : index
    %182 = vector.load %arg8[%c0_82, %c0_83] : memref<128x128xf32, #tpu.memory_space<vmem>>, vector<128x128xf32>
    %cst_84 = arith.constant dense<0.000000e+00> : vector<8x128xf32>
    %183 = tpu.matmul %180, %182, %cst_84 {dimension_numbers = #tpu.dot_dimension_numbers<[1], [0], [0], [1], [0, 0, 1, 1], [], []>} : vector<8x128xf32>, vector<128x128xf32>, vector<8x128xf32> -> vector<8x128xf32>
    %184 = vector.broadcast %17 : vector<1x128xf32> to vector<8x128xf32>
    %185 = arith.addf %183, %184 : vector<8x128xf32>
    %186 = arith.addf %156, %185 : vector<8x128xf32>
    %cst_85 = arith.constant 0.000000e+00 : f32
    %187 = vector.broadcast %cst_85 : f32 to vector<8x128xf32>
    %188 = arith.maximumf %186, %187 : vector<8x128xf32>
    %189 = math.floor %188 : vector<8x128xf32>
    %190 = arith.subf %186, %189 : vector<8x128xf32>
    %c32 = arith.constant 32 : index
    %c0_86 = arith.constant 0 : index
    %191 = vector.load %arg10[%c32, %c0_86] : memref<64x128xf32, #tpu.memory_space<vmem>>, vector<8x128xf32>
    tpu.vector_store %arg10[%c32, %c0_86], %189 {strides = array<i32>} : memref<64x128xf32, #tpu.memory_space<vmem>>, vector<8x128xf32>,
    %192 = vector.extract_strided_slice %14 {offsets = [40, 0], sizes = [8, 128], strides = [1, 1]} : vector<64x128xf32> to vector<8x128xf32>
    %193 = arith.addf %163, %192 : vector<8x128xf32>
    %cst_87 = arith.constant 0.000000e+00 : f32
    %194 = vector.broadcast %cst_87 : f32 to vector<8x128xf32>
    %195 = arith.maximumf %193, %194 : vector<8x128xf32>
    %196 = math.floor %195 : vector<8x128xf32>
    %197 = arith.subf %193, %196 : vector<8x128xf32>
    %c0_88 = arith.constant 0 : index
    %c0_89 = arith.constant 0 : index
    %198 = vector.load %arg4[%c0_88, %c0_89] : memref<128x128xf32, #tpu.memory_space<vmem>>, vector<128x128xf32>
    %cst_90 = arith.constant dense<0.000000e+00> : vector<8x128xf32>
    %199 = tpu.matmul %196, %198, %cst_90 {dimension_numbers = #tpu.dot_dimension_numbers<[1], [0], [0], [1], [0, 0, 1, 1], [], []>} : vector<8x128xf32>, vector<128x128xf32>, vector<8x128xf32> -> vector<8x128xf32>
    %200 = vector.broadcast %15 : vector<1x128xf32> to vector<8x128xf32>
    %201 = arith.addf %199, %200 : vector<8x128xf32>
    %202 = arith.addf %172, %201 : vector<8x128xf32>
    %cst_91 = arith.constant 0.000000e+00 : f32
    %203 = vector.broadcast %cst_91 : f32 to vector<8x128xf32>
    %204 = arith.maximumf %202, %203 : vector<8x128xf32>
    %205 = math.floor %204 : vector<8x128xf32>
    %206 = arith.subf %202, %205 : vector<8x128xf32>
    %c0_92 = arith.constant 0 : index
    %c0_93 = arith.constant 0 : index
    %207 = vector.load %arg6[%c0_92, %c0_93] : memref<128x128xf32, #tpu.memory_space<vmem>>, vector<128x128xf32>
    %cst_94 = arith.constant dense<0.000000e+00> : vector<8x128xf32>
    %208 = tpu.matmul %205, %207, %cst_94 {dimension_numbers = #tpu.dot_dimension_numbers<[1], [0], [0], [1], [0, 0, 1, 1], [], []>} : vector<8x128xf32>, vector<128x128xf32>, vector<8x128xf32> -> vector<8x128xf32>
    %209 = vector.broadcast %16 : vector<1x128xf32> to vector<8x128xf32>
    %210 = arith.addf %208, %209 : vector<8x128xf32>
    %211 = arith.addf %181, %210 : vector<8x128xf32>
    %cst_95 = arith.constant 0.000000e+00 : f32
    %212 = vector.broadcast %cst_95 : f32 to vector<8x128xf32>
    %213 = arith.maximumf %211, %212 : vector<8x128xf32>
    %214 = math.floor %213 : vector<8x128xf32>
    %215 = arith.subf %211, %214 : vector<8x128xf32>
    %c0_96 = arith.constant 0 : index
    %c0_97 = arith.constant 0 : index
    %216 = vector.load %arg8[%c0_96, %c0_97] : memref<128x128xf32, #tpu.memory_space<vmem>>, vector<128x128xf32>
    %cst_98 = arith.constant dense<0.000000e+00> : vector<8x128xf32>
    %217 = tpu.matmul %214, %216, %cst_98 {dimension_numbers = #tpu.dot_dimension_numbers<[1], [0], [0], [1], [0, 0, 1, 1], [], []>} : vector<8x128xf32>, vector<128x128xf32>, vector<8x128xf32> -> vector<8x128xf32>
    %218 = vector.broadcast %17 : vector<1x128xf32> to vector<8x128xf32>
    %219 = arith.addf %217, %218 : vector<8x128xf32>
    %220 = arith.addf %190, %219 : vector<8x128xf32>
    %cst_99 = arith.constant 0.000000e+00 : f32
    %221 = vector.broadcast %cst_99 : f32 to vector<8x128xf32>
    %222 = arith.maximumf %220, %221 : vector<8x128xf32>
    %223 = math.floor %222 : vector<8x128xf32>
    %224 = arith.subf %220, %223 : vector<8x128xf32>
    %c40 = arith.constant 40 : index
    %c0_100 = arith.constant 0 : index
    %225 = vector.load %arg10[%c40, %c0_100] : memref<64x128xf32, #tpu.memory_space<vmem>>, vector<8x128xf32>
    tpu.vector_store %arg10[%c40, %c0_100], %223 {strides = array<i32>} : memref<64x128xf32, #tpu.memory_space<vmem>>, vector<8x128xf32>,
    %226 = vector.extract_strided_slice %14 {offsets = [48, 0], sizes = [8, 128], strides = [1, 1]} : vector<64x128xf32> to vector<8x128xf32>
    %227 = arith.addf %197, %226 : vector<8x128xf32>
    %cst_101 = arith.constant 0.000000e+00 : f32
    %228 = vector.broadcast %cst_101 : f32 to vector<8x128xf32>
    %229 = arith.maximumf %227, %228 : vector<8x128xf32>
    %230 = math.floor %229 : vector<8x128xf32>
    %231 = arith.subf %227, %230 : vector<8x128xf32>
    %c0_102 = arith.constant 0 : index
    %c0_103 = arith.constant 0 : index
    %232 = vector.load %arg4[%c0_102, %c0_103] : memref<128x128xf32, #tpu.memory_space<vmem>>, vector<128x128xf32>
    %cst_104 = arith.constant dense<0.000000e+00> : vector<8x128xf32>
    %233 = tpu.matmul %230, %232, %cst_104 {dimension_numbers = #tpu.dot_dimension_numbers<[1], [0], [0], [1], [0, 0, 1, 1], [], []>} : vector<8x128xf32>, vector<128x128xf32>, vector<8x128xf32> -> vector<8x128xf32>
    %234 = vector.broadcast %15 : vector<1x128xf32> to vector<8x128xf32>
    %235 = arith.addf %233, %234 : vector<8x128xf32>
    %236 = arith.addf %206, %235 : vector<8x128xf32>
    %cst_105 = arith.constant 0.000000e+00 : f32
    %237 = vector.broadcast %cst_105 : f32 to vector<8x128xf32>
    %238 = arith.maximumf %236, %237 : vector<8x128xf32>
    %239 = math.floor %238 : vector<8x128xf32>
    %240 = arith.subf %236, %239 : vector<8x128xf32>
    %c0_106 = arith.constant 0 : index
    %c0_107 = arith.constant 0 : index
    %241 = vector.load %arg6[%c0_106, %c0_107] : memref<128x128xf32, #tpu.memory_space<vmem>>, vector<128x128xf32>
    %cst_108 = arith.constant dense<0.000000e+00> : vector<8x128xf32>
    %242 = tpu.matmul %239, %241, %cst_108 {dimension_numbers = #tpu.dot_dimension_numbers<[1], [0], [0], [1], [0, 0, 1, 1], [], []>} : vector<8x128xf32>, vector<128x128xf32>, vector<8x128xf32> -> vector<8x128xf32>
    %243 = vector.broadcast %16 : vector<1x128xf32> to vector<8x128xf32>
    %244 = arith.addf %242, %243 : vector<8x128xf32>
    %245 = arith.addf %215, %244 : vector<8x128xf32>
    %cst_109 = arith.constant 0.000000e+00 : f32
    %246 = vector.broadcast %cst_109 : f32 to vector<8x128xf32>
    %247 = arith.maximumf %245, %246 : vector<8x128xf32>
    %248 = math.floor %247 : vector<8x128xf32>
    %249 = arith.subf %245, %248 : vector<8x128xf32>
    %c0_110 = arith.constant 0 : index
    %c0_111 = arith.constant 0 : index
    %250 = vector.load %arg8[%c0_110, %c0_111] : memref<128x128xf32, #tpu.memory_space<vmem>>, vector<128x128xf32>
    %cst_112 = arith.constant dense<0.000000e+00> : vector<8x128xf32>
    %251 = tpu.matmul %248, %250, %cst_112 {dimension_numbers = #tpu.dot_dimension_numbers<[1], [0], [0], [1], [0, 0, 1, 1], [], []>} : vector<8x128xf32>, vector<128x128xf32>, vector<8x128xf32> -> vector<8x128xf32>
    %252 = vector.broadcast %17 : vector<1x128xf32> to vector<8x128xf32>
    %253 = arith.addf %251, %252 : vector<8x128xf32>
    %254 = arith.addf %224, %253 : vector<8x128xf32>
    %cst_113 = arith.constant 0.000000e+00 : f32
    %255 = vector.broadcast %cst_113 : f32 to vector<8x128xf32>
    %256 = arith.maximumf %254, %255 : vector<8x128xf32>
    %257 = math.floor %256 : vector<8x128xf32>
    %258 = arith.subf %254, %257 : vector<8x128xf32>
    %c48 = arith.constant 48 : index
    %c0_114 = arith.constant 0 : index
    %259 = vector.load %arg10[%c48, %c0_114] : memref<64x128xf32, #tpu.memory_space<vmem>>, vector<8x128xf32>
    tpu.vector_store %arg10[%c48, %c0_114], %257 {strides = array<i32>} : memref<64x128xf32, #tpu.memory_space<vmem>>, vector<8x128xf32>,
    %260 = vector.extract_strided_slice %14 {offsets = [56, 0], sizes = [8, 128], strides = [1, 1]} : vector<64x128xf32> to vector<8x128xf32>
    %261 = arith.addf %231, %260 : vector<8x128xf32>
    %cst_115 = arith.constant 0.000000e+00 : f32
    %262 = vector.broadcast %cst_115 : f32 to vector<8x128xf32>
    %263 = arith.maximumf %261, %262 : vector<8x128xf32>
    %264 = math.floor %263 : vector<8x128xf32>
    %c0_116 = arith.constant 0 : index
    %c0_117 = arith.constant 0 : index
    %265 = vector.load %arg4[%c0_116, %c0_117] : memref<128x128xf32, #tpu.memory_space<vmem>>, vector<128x128xf32>
    %cst_118 = arith.constant dense<0.000000e+00> : vector<8x128xf32>
    %266 = tpu.matmul %264, %265, %cst_118 {dimension_numbers = #tpu.dot_dimension_numbers<[1], [0], [0], [1], [0, 0, 1, 1], [], []>} : vector<8x128xf32>, vector<128x128xf32>, vector<8x128xf32> -> vector<8x128xf32>
    %267 = vector.broadcast %15 : vector<1x128xf32> to vector<8x128xf32>
    %268 = arith.addf %266, %267 : vector<8x128xf32>
    %269 = arith.addf %240, %268 : vector<8x128xf32>
    %cst_119 = arith.constant 0.000000e+00 : f32
    %270 = vector.broadcast %cst_119 : f32 to vector<8x128xf32>
    %271 = arith.maximumf %269, %270 : vector<8x128xf32>
    %272 = math.floor %271 : vector<8x128xf32>
    %c0_120 = arith.constant 0 : index
    %c0_121 = arith.constant 0 : index
    %273 = vector.load %arg6[%c0_120, %c0_121] : memref<128x128xf32, #tpu.memory_space<vmem>>, vector<128x128xf32>
    %cst_122 = arith.constant dense<0.000000e+00> : vector<8x128xf32>
    %274 = tpu.matmul %272, %273, %cst_122 {dimension_numbers = #tpu.dot_dimension_numbers<[1], [0], [0], [1], [0, 0, 1, 1], [], []>} : vector<8x128xf32>, vector<128x128xf32>, vector<8x128xf32> -> vector<8x128xf32>
    %275 = vector.broadcast %16 : vector<1x128xf32> to vector<8x128xf32>
    %276 = arith.addf %274, %275 : vector<8x128xf32>
    %277 = arith.addf %249, %276 : vector<8x128xf32>
    %cst_123 = arith.constant 0.000000e+00 : f32
    %278 = vector.broadcast %cst_123 : f32 to vector<8x128xf32>
    %279 = arith.maximumf %277, %278 : vector<8x128xf32>
    %280 = math.floor %279 : vector<8x128xf32>
    %c0_124 = arith.constant 0 : index
    %c0_125 = arith.constant 0 : index
    %281 = vector.load %arg8[%c0_124, %c0_125] : memref<128x128xf32, #tpu.memory_space<vmem>>, vector<128x128xf32>
    %cst_126 = arith.constant dense<0.000000e+00> : vector<8x128xf32>
    %282 = tpu.matmul %280, %281, %cst_126 {dimension_numbers = #tpu.dot_dimension_numbers<[1], [0], [0], [1], [0, 0, 1, 1], [], []>} : vector<8x128xf32>, vector<128x128xf32>, vector<8x128xf32> -> vector<8x128xf32>
    %283 = vector.broadcast %17 : vector<1x128xf32> to vector<8x128xf32>
    %284 = arith.addf %282, %283 : vector<8x128xf32>
    %285 = arith.addf %258, %284 : vector<8x128xf32>
    %cst_127 = arith.constant 0.000000e+00 : f32
    %286 = vector.broadcast %cst_127 : f32 to vector<8x128xf32>
    %287 = arith.maximumf %285, %286 : vector<8x128xf32>
    %288 = math.floor %287 : vector<8x128xf32>
    %c56 = arith.constant 56 : index
    %c0_128 = arith.constant 0 : index
    %289 = vector.load %arg10[%c56, %c0_128] : memref<64x128xf32, #tpu.memory_space<vmem>>, vector<8x128xf32>
    tpu.vector_store %arg10[%c56, %c0_128], %288 {strides = array<i32>} : memref<64x128xf32, #tpu.memory_space<vmem>>, vector<8x128xf32>,
    return
  }
}

</mosaic_0001>

<bundles_post_ra>
// kernel: snn_forward.1
= control target key start
LH: loop header
LB: loop body
LE: loop exit
PB: predicated region body
PF: predicated region fallthrough
CT: control target
= control target key end

     0   :  { %v3660_v0 = vmov 0   ;;  %v3661_v5 = vmov 0.0   ;;  %vm3662_vm0 = vmmov 0   ;;  %v84_v47 = vlaneseq  ;;  %s5515_s0 = inlined_call_operand.vmem [shape: f32[64,1], index: 0, kind: input, shape index: {}]   ;;  %s5516_s1 = inlined_call_operand.vmem [shape: f32[64,1], index: 1, kind: input, shape index: {}]   ;;  %s5517_s4 = inlined_call_operand.vmem [shape: f32[128,128], index: 4, kind: input, shape index: {}]   ;;  %s5518_s6 = inlined_call_operand.vmem [shape: f32[128,128], index: 6, kind: input, shape index: {}]   ;;  %s5519_s2 = inlined_call_operand.vmem [shape: f32[2,128], index: 2, kind: input, shape index: {}]   ;;  %s5520_s3 = inlined_call_operand.vmem [shape: f32[1,128], index: 3, kind: input, shape index: {}]   ;;  %s5521_s8 = inlined_call_operand.vmem [shape: f32[128,128], index: 8, kind: input, shape index: {}]   ;;  %s5522_s5 = inlined_call_operand.vmem [shape: f32[1,128], index: 5, kind: input, shape index: {}]   ;;  %s5523_s7 = inlined_call_operand.vmem [shape: f32[1,128], index: 7, kind: input, shape index: {}]   ;;  %s5524_s9 = inlined_call_operand.vmem [shape: f32[1,128], index: 9, kind: input, shape index: {}]   ;;  %s5525_s10 = inlined_call_operand.vmem [shape: f32[64,128], index: 10, kind: output, shape index: {}]  }
   0x1   :  { %3656 = vset.pattern.permute.xlu1 %v3660_v0  ;;  %3655 = vset.pattern.permute.xlu0 %v3660_v0  ;;  %v37_v1 = vld [vmem:[%s5515_s0 + $0x8] sm:$0xff]  ;;  %v36_v2 = vld [vmem:[%s5515_s0] sm:$0xff]  ;;  %v3735_v6 = vld [vmem:[%s5517_s4 + $0x78] sm:$0xff] }
   0x2   :  { %51 = vperm.xlu1 %3656, %v37_v1   ;;  %46 = vperm.xlu0 %3655, %v36_v2   ;;  %v97_v3 = vld [vmem:[%s5516_s1 + $0x8] sm:$0xff]  ;;  %v96_v4 = vld [vmem:[%s5516_s1] sm:$0xff]  ;;  %v3740_v7 = vld [vmem:[%s5517_s4 + $0x70] sm:$0xff]  ;;  %v85_v48 = vshrl.u32 %v84_v47, 7 }
   0x3   :  { %2812 = vmatprep.subr.mxu0 %v3661_v5  ;;  %2847 = vmatprep.subr.mxu1 %v3661_v5  ;;  %v98_v8 = vld [vmem:[%s5516_s1 + $0x10] sm:$0xff]  ;;  %v3754_v10 = vld [vmem:[%s5517_s4 + $0x68] sm:$0xff]  ;;  %v99_v11 = vld [vmem:[%s5516_s1 + $0x18] sm:$0xff] }
   0x4   :  { %v38_v9 = vld [vmem:[%s5515_s0 + $0x10] sm:$0xff]  ;;  %2813 = vmatpush3.msra.mxu0 %v3735_v6  ;;  %v39_v12 = vld [vmem:[%s5515_s0 + $0x18] sm:$0xff]  ;;  %2844 = vmatprep.mubr.msk.f32.mxu0 %vm3662_vm0, %v3661_v5  ;;  %v3769_v13 = vld [vmem:[%s5517_s4 + $0x60] sm:$0xff]  ;;  %v86_v49 = vsub.s32 0, %v85_v48  ;;  %v146_v50 = vsub.s32 1, %v85_v48 }
   0x5   :  { %2814 = vmatprep.subr.mxu0 %v3661_v5  ;;  %2879 = vmatprep.mubr.msk.f32.mxu1 %vm3662_vm0, %v3661_v5  ;;  %v3777_v14 = vld [vmem:[%s5517_s4 + $0x58] sm:$0xff]  ;;  %v100_v15 = vld [vmem:[%s5516_s1 + $0x20] sm:$0xff]  ;;  %v3791_v17 = vld [vmem:[%s5517_s4 + $0x50] sm:$0xff] }
   0x6   :  { %111 = vperm.xlu1 %3656, %v97_v3   ;;  %106 = vperm.xlu0 %3655, %v96_v4   ;;  %v40_v16 = vld [vmem:[%s5515_s0 + $0x20] sm:$0xff]  ;;  %v101_v18 = vld [vmem:[%s5516_s1 + $0x28] sm:$0xff]  ;;  %v102_v22 = vld [vmem:[%s5516_s1 + $0x30] sm:$0xff] }
   0x7   :  { %2815 = vmatpush3.msra.mxu0 %v3740_v7  ;;  %v41_v19 = vld [vmem:[%s5515_s0 + $0x28] sm:$0xff]  ;;  %v3810_v21 = vld [vmem:[%s5517_s4 + $0x40] sm:$0xff]  ;;  %v42_v23 = vld [vmem:[%s5515_s0 + $0x30] sm:$0xff] }
   0x8   :  { %2816 = vmatprep.subr.mxu0 %v3661_v5  ;;  %v3804_v20 = vld [vmem:[%s5517_s4 + $0x48] sm:$0xff]  ;;  %v3824_v24 = vld [vmem:[%s5517_s4 + $0x38] sm:$0xff]  ;;  %v3837_v27 = vld [vmem:[%s5517_s4 + $0x30] sm:$0xff] }
   0x9   :  { %2817 = vmatpush3.msra.mxu0 %v3754_v10  ;;  %v103_v25 = vld [vmem:[%s5516_s1 + $0x38] sm:$0xff]  ;;  %v3843_v28 = vld [vmem:[%s5517_s4 + $0x28] sm:$0xff]  ;;  %v3850_v29 = vld [vmem:[%s5517_s4 + $0x20] sm:$0xff] }
   0xa   :  { %116 = vperm.xlu1 %3656, %v98_v8   ;;  %56 = vperm.xlu0 %3655, %v38_v9   ;;  %v43_v26 = vld [vmem:[%s5515_s0 + $0x38] sm:$0xff]  ;;  %v3864_v31 = vld [vmem:[%s5517_s4 + $0x10] sm:$0xff]  ;;  %v3871_v32 = vld [vmem:[%s5517_s4 + $0x8] sm:$0xff] }
   0xb   :  { %2818 = vmatprep.subr.mxu0 %v3661_v5  ;;  %v3857_v30 = vld [vmem:[%s5517_s4 + $0x18] sm:$0xff]  ;;  %v3878_v33 = vld [vmem:[%s5517_s4] sm:$0xff]  ;;  %v3892_v35 = vld [vmem:[%s5518_s6 + $0x70] sm:$0xff] }
   0xc   :  { %2819 = vmatpush3.msra.mxu0 %v3769_v13  ;;  %v3887_v34 = vld [vmem:[%s5518_s6 + $0x78] sm:$0xff]  ;;  %v3899_v36 = vld [vmem:[%s5518_s6 + $0x68] sm:$0xff]  ;;  %v3906_v37 = vld [vmem:[%s5518_s6 + $0x60] sm:$0xff] }
   0xd   :  { %2820 = vmatprep.subr.mxu0 %v3661_v5  ;;  %2848 = vmatpush3.msra.mxu1 %v3887_v34  ;;  %v3913_v38 = vld [vmem:[%s5518_s6 + $0x58] sm:$0xff]  ;;  %v3920_v39 = vld [vmem:[%s5518_s6 + $0x50] sm:$0xff]  ;;  %v3927_v40 = vld [vmem:[%s5518_s6 + $0x48] sm:$0xff] }
   0xe   :  { %121 = vperm.xlu1 %3656, %v99_v11   ;;  %61 = vperm.xlu0 %3655, %v39_v12   ;;  %v3934_v41 = vld [vmem:[%s5518_s6 + $0x40] sm:$0xff]  ;;  %v3941_v42 = vld [vmem:[%s5518_s6 + $0x38] sm:$0xff]  ;;  %v3948_v43 = vld [vmem:[%s5518_s6 + $0x30] sm:$0xff] }
   0xf   :  { %2821 = vmatpush3.msra.mxu0 %v3777_v14  ;;  %2849 = vmatprep.subr.mxu1 %v3661_v5  ;;  %v3955_v44 = vld [vmem:[%s5518_s6 + $0x28] sm:$0xff]  ;;  %v3962_v45 = vld [vmem:[%s5518_s6 + $0x20] sm:$0xff]  ;;  %v3969_v46 = vld [vmem:[%s5518_s6 + $0x18] sm:$0xff] }
  0x10   :  { %2822 = vmatprep.subr.mxu0 %v3661_v5  ;;  %2850 = vmatpush3.msra.mxu1 %v3892_v35  ;;  %v35_v51 = vld [vmem:[%s5519_s2] sm:$0x3] }
  0x11   :  { %2823 = vmatpush3.msra.mxu0 %v3791_v17  ;;  %2851 = vmatprep.subr.mxu1 %v3661_v5  ;;  %v87_v54 = vrot.slane %v35_v51, %v86_v49  ;;  %v147_v55 = vrot.slane %v35_v51, %v146_v50  ;;  %v2400_v62 = vld [vmem:[%s5520_s3] ss:$0 sm:$0xff] }
  0x12   :  { %126 = vperm.xlu1 %3656, %v100_v15   ;;  %66 = vperm.xlu0 %3655, %v40_v16  }
  0x13   :  { %2824 = vmatprep.subr.mxu0 %v3661_v5  ;;  %2852 = vmatpush3.msra.mxu1 %v3899_v36 }
  0x14   :  { %2825 = vmatpush3.msra.mxu0 %v3804_v20  ;;  %2853 = vmatprep.subr.mxu1 %v3661_v5 }
  0x15   :  { %2826 = vmatprep.subr.mxu0 %v3661_v5  ;;  %2854 = vmatpush3.msra.mxu1 %v3906_v37 }
  0x16   :  { %131 = vperm.xlu1 %3656, %v101_v18   ;;  %71 = vperm.xlu0 %3655, %v41_v19  }
  0x17   :  { %2827 = vmatpush3.msra.mxu0 %v3810_v21  ;;  %2855 = vmatprep.subr.mxu1 %v3661_v5 }
  0x18   :  { %2828 = vmatprep.subr.mxu0 %v3661_v5  ;;  %2856 = vmatpush3.msra.mxu1 %v3913_v38 }
  0x19   :  { %2829 = vmatpush3.msra.mxu0 %v3824_v24  ;;  %2857 = vmatprep.subr.mxu1 %v3661_v5 }
  0x1a   :  { %136 = vperm.xlu1 %3656, %v102_v22   ;;  %76 = vperm.xlu0 %3655, %v42_v23  }
  0x1b   :  { %2830 = vmatprep.subr.mxu0 %v3661_v5  ;;  %2858 = vmatpush3.msra.mxu1 %v3920_v39 }
  0x1c   :  { %2831 = vmatpush3.msra.mxu0 %v3837_v27  ;;  %2859 = vmatprep.subr.mxu1 %v3661_v5 }
  0x1d   :  { %2832 = vmatprep.subr.mxu0 %v3661_v5  ;;  %2860 = vmatpush3.msra.mxu1 %v3927_v40 }
  0x1e   :  { %141 = vperm.xlu1 %3656, %v103_v25   ;;  %81 = vperm.xlu0 %3655, %v43_v26  }
  0x1f   :  { %2833 = vmatpush3.msra.mxu0 %v3843_v28  ;;  %2861 = vmatprep.subr.mxu1 %v3661_v5 }
  0x20   :  { %2834 = vmatprep.subr.mxu0 %v3661_v5  ;;  %2862 = vmatpush3.msra.mxu1 %v3934_v41 }
  0x21   :  { %2835 = vmatpush3.msra.mxu0 %v3850_v29  ;;  %2863 = vmatprep.subr.mxu1 %v3661_v5 }
  0x22   :  { %2836 = vmatprep.subr.mxu0 %v3661_v5  ;;  %2864 = vmatpush3.msra.mxu1 %v3941_v42 }
  0x23   :  { %2837 = vmatpush3.msra.mxu0 %v3857_v30  ;;  %2865 = vmatprep.subr.mxu1 %v3661_v5 }
  0x24   :  { %2838 = vmatprep.subr.mxu0 %v3661_v5  ;;  %2866 = vmatpush3.msra.mxu1 %v3948_v43 }
  0x25   :  { %2839 = vmatpush3.msra.mxu0 %v3864_v31  ;;  %2867 = vmatprep.subr.mxu1 %v3661_v5 }
  0x26   :  { %2840 = vmatprep.subr.mxu0 %v3661_v5  ;;  %2868 = vmatpush3.msra.mxu1 %v3955_v44 }
  0x27   :  { %2841 = vmatpush3.msra.mxu0 %v3871_v32  ;;  %2869 = vmatprep.subr.mxu1 %v3661_v5 }
  0x28   :  { %2842 = vmatprep.subr.mxu0 %v3661_v5  ;;  %2870 = vmatpush3.msra.mxu1 %v3962_v45 }
  0x29   :  { %2843 = vmatpush3.msra.mxu0 %v3878_v33  ;;  %2871 = vmatprep.subr.mxu1 %v3661_v5 }
  0x2a   :  { %2882 = vmatprep.subr.mxu0 %v3661_v5  ;;  %2872 = vmatpush3.msra.mxu1 %v3969_v46 }
  0x2b   :  { %2873 = vmatprep.subr.mxu1 %v3661_v5 }
  0x7d   :  { %v52_v52 = vpop.permute.xlu1 %51  ;;  %v47_v53 = vpop.permute.xlu0 %46 }
  0x7e   :  { %v89_v56 = vmul.f32 %v87_v54, %v52_v52  ;;  %v88_v59 = vmul.f32 %v87_v54, %v47_v53 }
  0x81   :  { %v112_v57 = vpop.permute.xlu1 %111  ;;  %v107_v58 = vpop.permute.xlu0 %106 }
  0x82   :  { %v149_v60 = vmul.f32 %v147_v55, %v112_v57  ;;  %v148_v61 = vmul.f32 %v147_v55, %v107_v58 }
  0x84   :  { %v157_v63 = vadd.f32 %v149_v60, %v89_v56  ;;  %v156_v0 = vadd.f32 %v148_v61, %v88_v59 }
  0x85   :  { %v117_v1 = vpop.permute.xlu1 %116  ;;  %v57_v2 = vpop.permute.xlu0 %56 }
  0x86   :  { %v172_v3 = vadd.f32 %v2400_v62, %v157_v63  ;;  %v171_v4 = vadd.f32 %v2400_v62, %v156_v0  ;;  %v150_v8 = vmul.f32 %v147_v55, %v117_v1  ;;  %v90_v9 = vmul.f32 %v87_v54, %v57_v2 }
  0x88   :  { %v158_v11 = vadd.f32 %v150_v8, %v90_v9  ;;  %v183_v12 = vmax.f32 %v171_v4, 0.0 }
  0x89   :  { %v122_v15 = vpop.permute.xlu1 %121  ;;  %v62_v16 = vpop.permute.xlu0 %61 }
  0x8a   :  { %v173_v18 = vadd.f32 %v2400_v62, %v158_v11  ;;  %v151_v19 = vmul.f32 %v147_v55, %v122_v15  ;;  %v91_v22 = vmul.f32 %v87_v54, %v62_v16  ;;  %v184_v23 = vfloor.f32 %v183_v12 }
  0x8c   :  { %v159_v25 = vadd.f32 %v151_v19, %v91_v22  ;;  %v185_v26 = vsub.f32 %v171_v4, %v184_v23  ;;  %2845 = vmatmul.mubr.f32.vlgmr.msra.gmra.mxu0 %v184_v23 }
  0x8d   :  { %v127_v47 = vpop.permute.xlu1 %126  ;;  %v67_v48 = vpop.permute.xlu0 %66  ;;  %2914 = vmatprep.mubr.msk.f32.mxu0 %vm3662_vm0, %v3661_v5 }
  0x8e   :  { %v174_v49 = vadd.f32 %v2400_v62, %v159_v25  ;;  %v475_v50 = vadd.f32 %v185_v26, %v172_v3  ;;  %v152_v51 = vmul.f32 %v147_v55, %v127_v47  ;;  %v92_v52 = vmul.f32 %v87_v54, %v67_v48 }
  0x90   :  { %v476_v53 = vmax.f32 %v475_v50, 0.0  ;;  %v160_v56 = vadd.f32 %v152_v51, %v92_v52 }
  0x91   :  { %v132_v57 = vpop.permute.xlu1 %131  ;;  %v72_v58 = vpop.permute.xlu0 %71 }
  0x92   :  { %v3983_v59 = vfloor.f32 %v476_v53  ;;  %v175_v60 = vadd.f32 %v2400_v62, %v160_v56  ;;  %v153_v61 = vmul.f32 %v147_v55, %v132_v57  ;;  %v93_v63 = vmul.f32 %v87_v54, %v72_v58 }
  0x94   :  { %v478_v0 = vsub.f32 %v475_v50, %v3983_v59  ;;  %v161_v1 = vadd.f32 %v153_v61, %v93_v63 }
  0x95   :  { %v137_v2 = vpop.permute.xlu1 %136  ;;  %v77_v4 = vpop.permute.xlu0 %76 }
  0x96   :  { %v750_v8 = vadd.f32 %v478_v0, %v173_v18  ;;  %v176_v9 = vadd.f32 %v2400_v62, %v161_v1  ;;  %v154_v11 = vmul.f32 %v147_v55, %v137_v2  ;;  %v94_v3 = vmul.f32 %v87_v54, %v77_v4 }
  0x98   :  { %v751_v12 = vmax.f32 %v750_v8, 0.0  ;;  %v162_v15 = vadd.f32 %v154_v11, %v94_v3  ;;  %v4027_v11 = vld [vmem:[%s5521_s8 + $0x78] sm:$0xff]  ;;  %v4032_v3 = vld [vmem:[%s5521_s8 + $0x70] sm:$0xff] }
  0x99   :  { %v142_v16 = vpop.permute.xlu1 %141  ;;  %v82_v19 = vpop.permute.xlu0 %81  ;;  %2883 = vmatpush3.msra.mxu0 %v4027_v11 }
  0x9a   :  { %v3986_v22 = vfloor.f32 %v751_v12  ;;  %v177_v23 = vadd.f32 %v2400_v62, %v162_v15  ;;  %v155_v25 = vmul.f32 %v147_v55, %v142_v16  ;;  %v95_v26 = vmul.f32 %v87_v54, %v82_v19  ;;  %2884 = vmatprep.subr.mxu0 %v3661_v5  ;;  %v4039_v12 = vld [vmem:[%s5521_s8 + $0x68] sm:$0xff]  ;;  %v4046_v15 = vld [vmem:[%s5521_s8 + $0x60] sm:$0xff]  ;;  %v4053_v16 = vld [vmem:[%s5521_s8 + $0x58] sm:$0xff] }
  0x9b   :  { %2885 = vmatpush3.msra.mxu0 %v4032_v3  ;;  %v4060_v19 = vld [vmem:[%s5521_s8 + $0x50] sm:$0xff] }
  0x9c   :  { %v753_v47 = vsub.f32 %v750_v8, %v3986_v22  ;;  %v163_v48 = vadd.f32 %v155_v25, %v95_v26  ;;  %v4013_v8 = vld [vmem:[%s5518_s6 + $0x8] sm:$0xff]  ;;  %2886 = vmatprep.subr.mxu0 %v3661_v5  ;;  %v4074_v25 = vld [vmem:[%s5521_s8 + $0x40] sm:$0xff]  ;;  %v4081_v26 = vld [vmem:[%s5521_s8 + $0x38] sm:$0xff] }
  0x9d   :  { %2887 = vmatpush3.msra.mxu0 %v4039_v12 }
  0x9e   :  { %v1025_v50 = vadd.f32 %v753_v47, %v174_v49  ;;  %v178_v51 = vadd.f32 %v2400_v62, %v163_v48  ;;  %2888 = vmatprep.subr.mxu0 %v3661_v5  ;;  %v4088_v47 = vld [vmem:[%s5521_s8 + $0x30] sm:$0xff]  ;;  %v4095_v48 = vld [vmem:[%s5521_s8 + $0x28] sm:$0xff] }
  0x9f   :  { %2889 = vmatpush3.msra.mxu0 %v4046_v15 }
  0xa0   :  { %v1026_v52 = vmax.f32 %v1025_v50, 0.0  ;;  %2890 = vmatprep.subr.mxu0 %v3661_v5 }
  0xa1   :  { %2891 = vmatpush3.msra.mxu0 %v4053_v16 }
  0xa2   :  { %v3989_v53 = vfloor.f32 %v1026_v52  ;;  %2892 = vmatprep.subr.mxu0 %v3661_v5 }
  0xa3   :  { %2893 = vmatpush3.msra.mxu0 %v4060_v19 }
  0xa4   :  { %v1028_v18 = vsub.f32 %v1025_v50, %v3989_v53  ;;  %2894 = vmatprep.subr.mxu0 %v3661_v5  ;;  %v4102_v50 = vld [vmem:[%s5521_s8 + $0x20] sm:$0xff] }
  0xa6   :  { %v1300_v56 = vadd.f32 %v1028_v18, %v175_v60  ;;  %v4006_v60 = vld [vmem:[%s5518_s6 + $0x10] sm:$0xff] }
  0xa7   :  { %2874 = vmatpush3.msra.mxu1 %v4006_v60 }
  0xa8   :  { %v1301_v57 = vmax.f32 %v1300_v56, 0.0  ;;  %2875 = vmatprep.subr.mxu1 %v3661_v5 }
  0xa9   :  { %2876 = vmatpush3.msra.mxu1 %v4013_v8 }
  0xaa   :  { %v3992_v58 = vfloor.f32 %v1301_v57  ;;  %2877 = vmatprep.subr.mxu1 %v3661_v5 }
  0xac   :  { %v1303_v61 = vsub.f32 %v1300_v56, %v3992_v58 }
  0xae   :  { %v1575_v63 = vadd.f32 %v1303_v61, %v176_v9  ;;  %v4020_v9 = vld [vmem:[%s5518_s6] sm:$0xff] }
  0xaf   :  { %2878 = vmatpush3.msra.mxu1 %v4020_v9 }
  0xb0   :  { %v1576_v0 = vmax.f32 %v1575_v63, 0.0  ;;  %2917 = vmatprep.subr.mxu1 %v3661_v5 }
  0xb2   :  { %v3995_v55 = vfloor.f32 %v1576_v0  ;;  %v4194_v0 = vld [vmem:[%s5521_s8 + $0x10] sm:$0xff] }
  0xb4   :  { %5528 = vst [vmem:[#allocation2_spill] sm:$0xff] %v3995_v55  ;;  %v1578_v54 = vsub.f32 %v1575_v63, %v3995_v55 }
  0xb6   :  { %v1850_v1 = vadd.f32 %v1578_v54, %v177_v23  ;;  %v4067_v23 = vld [vmem:[%s5521_s8 + $0x48] sm:$0xff] }
  0xb7   :  { %2895 = vmatpush3.msra.mxu0 %v4067_v23  ;;  %v4203_v54 = vld [vmem:[%s5521_s8 + $0x8] sm:$0xff] }
  0xb8   :  { %v1851_v49 = vmax.f32 %v1850_v1, 0.0  ;;  %2896 = vmatprep.subr.mxu0 %v3661_v5 }
  0xb9   :  { %2897 = vmatpush3.msra.mxu0 %v4074_v25 }
  0xba   :  { %v3998_v62 = vfloor.f32 %v1851_v49  ;;  %2898 = vmatprep.subr.mxu0 %v3661_v5  ;;  %v4222_v49 = vld [vmem:[%s5523_s7] ss:$0 sm:$0xff] }
  0xbb   :  { %2899 = vmatpush3.msra.mxu0 %v4081_v26 }
  0xbc   :  { %5529 = vst [vmem:[#allocation3_spill] sm:$0xff] %v3998_v62  ;;  %v1853_v2 = vsub.f32 %v1850_v1, %v3998_v62  ;;  %2900 = vmatprep.subr.mxu0 %v3661_v5  ;;  %v4212_v1 = vld [vmem:[%s5521_s8] sm:$0xff] }
  0xbd   :  { %2901 = vmatpush3.msra.mxu0 %v4088_v47 }
  0xbe   :  { %v4001_v4 = vadd.f32 %v1853_v2, %v178_v51  ;;  %2902 = vmatprep.subr.mxu0 %v3661_v5  ;;  %v4111_v51 = vld [vmem:[%s5522_s5] ss:$0 sm:$0xff] }
  0xbf   :  { %2903 = vmatpush3.msra.mxu0 %v4095_v48 }
  0xc0   :  { %5530 = vst [vmem:[#allocation4_spill] sm:$0xff] %v4001_v4  ;;  %2904 = vmatprep.subr.mxu0 %v3661_v5 }
  0xc1   :  { %2905 = vmatpush3.msra.mxu0 %v4102_v50 }
  0xc2   :  { %2906 = vmatprep.subr.mxu0 %v3661_v5 }
 0x14c   :  { %v274_v52 = vpop.f32.mrf.mxu0 }
 0x14d   :  { %v4114_v18 = vadd.f32 %v4111_v51, %v274_v52 }
 0x14e   :  { %v2846_v56 = vpop.f32.mrf.mxu0 }
 0x14f   :  { %v279_v57 = vmax.f32 %v4114_v18, 0.0 }
 0x151   :  { %v4117_v61 = vfloor.f32 %v279_v57 }
 0x153   :  { %2880 = vmatmul.mubr.f32.vlgmr.msra.gmra.mxu1 %v4117_v61  ;;  %v5531_v4 = vsub.f32 %v4114_v18, %v4117_v61  ;;  %v4475_v18 = vld [vmem:[%s5517_s4 + $0x40] sm:$0xff]  ;;  %v4482_v61 = vld [vmem:[%s5517_s4 + $0x38] sm:$0xff] }
 0x154   :  { %2918 = vmatpush3.msra.mxu1 %v3735_v6  ;;  %2949 = vmatprep.mubr.msk.f32.mxu1 %vm3662_vm0, %v3661_v5 }
 0x155   :  { %2919 = vmatprep.subr.mxu1 %v3661_v5 }
 0x156   :  { %2920 = vmatpush3.msra.mxu1 %v3740_v7 }
 0x157   :  { %2921 = vmatprep.subr.mxu1 %v3661_v5 }
 0x158   :  { %2922 = vmatpush3.msra.mxu1 %v3754_v10 }
 0x159   :  { %2923 = vmatprep.subr.mxu1 %v3661_v5 }
 0x15a   :  { %2924 = vmatpush3.msra.mxu1 %v3769_v13 }
 0x15b   :  { %2925 = vmatprep.subr.mxu1 %v3661_v5 }
 0x15c   :  { %2926 = vmatpush3.msra.mxu1 %v3777_v14 }
 0x15d   :  { %2927 = vmatprep.subr.mxu1 %v3661_v5 }
 0x15e   :  { %2928 = vmatpush3.msra.mxu1 %v3791_v17 }
 0x15f   :  { %2929 = vmatprep.subr.mxu1 %v3661_v5 }
 0x160   :  { %2930 = vmatpush3.msra.mxu1 %v3804_v20 }
 0x161   :  { %2931 = vmatprep.subr.mxu1 %v3661_v5 }
 0x162   :  { %2932 = vmatpush3.msra.mxu1 %v3810_v21 }
 0x163   :  { %2933 = vmatprep.subr.mxu1 %v3661_v5 }
 0x164   :  { %2934 = vmatpush3.msra.mxu1 %v3824_v24 }
 0x165   :  { %2935 = vmatprep.subr.mxu1 %v3661_v5 }
 0x166   :  { %2936 = vmatpush3.msra.mxu1 %v3837_v27 }
 0x167   :  { %2937 = vmatprep.subr.mxu1 %v3661_v5 }
 0x168   :  { %2938 = vmatpush3.msra.mxu1 %v3843_v28 }
 0x169   :  { %2939 = vmatprep.subr.mxu1 %v3661_v5 }
 0x16a   :  { %2940 = vmatpush3.msra.mxu1 %v3850_v29 }
 0x16b   :  { %2941 = vmatprep.subr.mxu1 %v3661_v5 }
 0x16c   :  { %2942 = vmatpush3.msra.mxu1 %v3857_v30 }
 0x16d   :  { %2943 = vmatprep.subr.mxu1 %v3661_v5 }
 0x16e   :  { %2944 = vmatpush3.msra.mxu1 %v3864_v31 }
 0x16f   :  { %2945 = vmatprep.subr.mxu1 %v3661_v5 }
 0x170   :  { %2946 = vmatpush3.msra.mxu1 %v3871_v32 }
 0x171   :  { %2947 = vmatprep.subr.mxu1 %v3661_v5 }
 0x172   :  { %2948 = vmatpush3.msra.mxu1 %v3878_v33 }
 0x173   :  { %2950 = vmatmul.mubr.f32.vlgmr.msra.gmra.mxu1 %v3983_v59  ;;  %2987 = vmatprep.subr.mxu1 %v3661_v5  ;;  %v4186_v59 = vld [vmem:[%s5521_s8 + $0x18] sm:$0xff] }
 0x174   :  { %2988 = vmatpush3.msra.mxu1 %v4027_v11  ;;  %3019 = vmatprep.mubr.msk.f32.mxu1 %vm3662_vm0, %v3661_v5 }
 0x175   :  { %2989 = vmatprep.subr.mxu1 %v3661_v5  ;;  %2907 = vmatpush3.msra.mxu0 %v4186_v59 }
 0x176   :  { %2990 = vmatpush3.msra.mxu1 %v4032_v3  ;;  %2908 = vmatprep.subr.mxu0 %v3661_v5 }
 0x177   :  { %2991 = vmatprep.subr.mxu1 %v3661_v5  ;;  %2909 = vmatpush3.msra.mxu0 %v4194_v0 }
 0x178   :  { %2992 = vmatpush3.msra.mxu1 %v4039_v12  ;;  %2910 = vmatprep.subr.mxu0 %v3661_v5 }
 0x179   :  { %2993 = vmatprep.subr.mxu1 %v3661_v5  ;;  %2911 = vmatpush3.msra.mxu0 %v4203_v54 }
 0x17a   :  { %2994 = vmatpush3.msra.mxu1 %v4046_v15  ;;  %2912 = vmatprep.subr.mxu0 %v3661_v5 }
 0x17b   :  { %2995 = vmatprep.subr.mxu1 %v3661_v5  ;;  %2913 = vmatpush3.msra.mxu0 %v4212_v1 }
 0x17c   :  { %2996 = vmatpush3.msra.mxu1 %v4053_v16  ;;  %2952 = vmatprep.subr.mxu0 %v3661_v5 }
 0x17d   :  { %2997 = vmatprep.subr.mxu1 %v3661_v5 }
 0x17e   :  { %2998 = vmatpush3.msra.mxu1 %v4060_v19 }
 0x17f   :  { %2999 = vmatprep.subr.mxu1 %v3661_v5 }
 0x180   :  { %3000 = vmatpush3.msra.mxu1 %v4067_v23 }
 0x181   :  { %3001 = vmatprep.subr.mxu1 %v3661_v5 }
 0x182   :  { %3002 = vmatpush3.msra.mxu1 %v4074_v25 }
 0x183   :  { %3003 = vmatprep.subr.mxu1 %v3661_v5 }
 0x184   :  { %3004 = vmatpush3.msra.mxu1 %v4081_v26 }
 0x185   :  { %3005 = vmatprep.subr.mxu1 %v3661_v5 }
 0x186   :  { %3006 = vmatpush3.msra.mxu1 %v4088_v47 }
 0x187   :  { %3007 = vmatprep.subr.mxu1 %v3661_v5 }
 0x188   :  { %3008 = vmatpush3.msra.mxu1 %v4095_v48 }
 0x189   :  { %3009 = vmatprep.subr.mxu1 %v3661_v5 }
 0x18a   :  { %3010 = vmatpush3.msra.mxu1 %v4102_v50 }
 0x18b   :  { %3011 = vmatprep.subr.mxu1 %v3661_v5 }
 0x18c   :  { %3012 = vmatpush3.msra.mxu1 %v4186_v59 }
 0x18d   :  { %3013 = vmatprep.subr.mxu1 %v3661_v5 }
 0x18e   :  { %3014 = vmatpush3.msra.mxu1 %v4194_v0 }
 0x18f   :  { %3015 = vmatprep.subr.mxu1 %v3661_v5 }
 0x190   :  { %3016 = vmatpush3.msra.mxu1 %v4203_v54 }
 0x191   :  { %3017 = vmatprep.subr.mxu1 %v3661_v5 }
 0x192   :  { %3018 = vmatpush3.msra.mxu1 %v4212_v1 }
 0x193   :  { %3057 = vmatprep.subr.mxu1 %v3661_v5 }
 0x213   :  { %v370_v2 = vpop.f32.mrf.mxu1 }
 0x214   :  { %v4225_v52 = vadd.f32 %v4222_v49, %v370_v2 }
 0x215   :  { %v2881_v56 = vpop.f32.mrf.mxu1 }
 0x216   :  { %v375_v57 = vmax.f32 %v4225_v52, 0.0 }
 0x218   :  { %v4228_v63 = vfloor.f32 %v375_v57 }
 0x21a   :  { %2915 = vmatmul.mubr.f32.vlgmr.msra.gmra.mxu0 %v4228_v63 }
 0x21b   :  { %2953 = vmatpush3.msra.mxu0 %v3887_v34  ;;  %2984 = vmatprep.mubr.msk.f32.mxu0 %vm3662_vm0, %v3661_v5 }
 0x21c   :  { %2954 = vmatprep.subr.mxu0 %v3661_v5 }
 0x21d   :  { %2955 = vmatpush3.msra.mxu0 %v3892_v35 }
 0x21e   :  { %2956 = vmatprep.subr.mxu0 %v3661_v5 }
 0x21f   :  { %2957 = vmatpush3.msra.mxu0 %v3899_v36 }
 0x220   :  { %2958 = vmatprep.subr.mxu0 %v3661_v5 }
 0x221   :  { %2959 = vmatpush3.msra.mxu0 %v3906_v37 }
 0x222   :  { %2960 = vmatprep.subr.mxu0 %v3661_v5 }
 0x223   :  { %2961 = vmatpush3.msra.mxu0 %v3913_v38 }
 0x224   :  { %2962 = vmatprep.subr.mxu0 %v3661_v5 }
 0x225   :  { %2963 = vmatpush3.msra.mxu0 %v3920_v39 }
 0x226   :  { %2964 = vmatprep.subr.mxu0 %v3661_v5 }
 0x227   :  { %2965 = vmatpush3.msra.mxu0 %v3927_v40 }
 0x228   :  { %2966 = vmatprep.subr.mxu0 %v3661_v5 }
 0x229   :  { %2967 = vmatpush3.msra.mxu0 %v3934_v41 }
 0x22a   :  { %2968 = vmatprep.subr.mxu0 %v3661_v5 }
 0x22b   :  { %2969 = vmatpush3.msra.mxu0 %v3941_v42 }
 0x22c   :  { %2970 = vmatprep.subr.mxu0 %v3661_v5 }
 0x22d   :  { %2971 = vmatpush3.msra.mxu0 %v3948_v43 }
 0x22e   :  { %2972 = vmatprep.subr.mxu0 %v3661_v5 }
 0x22f   :  { %2973 = vmatpush3.msra.mxu0 %v3955_v44 }
 0x230   :  { %2974 = vmatprep.subr.mxu0 %v3661_v5 }
 0x231   :  { %2975 = vmatpush3.msra.mxu0 %v3962_v45 }
 0x232   :  { %2976 = vmatprep.subr.mxu0 %v3661_v5 }
 0x233   :  { %v561_v2 = vpop.f32.mrf.mxu1  ;;  %2977 = vmatpush3.msra.mxu0 %v3969_v46 }
 0x234   :  { %v562_v56 = vadd.f32 %v4111_v51, %v561_v2  ;;  %2978 = vmatprep.subr.mxu0 %v3661_v5 }
 0x235   :  { %v2951_v57 = vpop.f32.mrf.mxu1  ;;  %2979 = vmatpush3.msra.mxu0 %v4006_v60 }
 0x236   :  { %v4266_v62 = vadd.f32 %v562_v56, %v5531_v4  ;;  %2980 = vmatprep.subr.mxu0 %v3661_v5 }
 0x237   :  { %2981 = vmatpush3.msra.mxu0 %v4013_v8 }
 0x238   :  { %v566_v55 = vmax.f32 %v4266_v62, 0.0  ;;  %2982 = vmatprep.subr.mxu0 %v3661_v5 }
 0x239   :  { %2983 = vmatpush3.msra.mxu0 %v4020_v9 }
 0x23a   :  { %v4273_v2 = vfloor.f32 %v566_v55  ;;  %3022 = vmatprep.subr.mxu0 %v3661_v5 }
 0x23c   :  { %2985 = vmatmul.mubr.f32.vlgmr.msra.gmra.mxu0 %v4273_v2  ;;  %v568_v4 = vsub.f32 %v4266_v62, %v4273_v2  ;;  %v4429_v62 = vld [vmem:[%s5517_s4 + $0x70] sm:$0xff] }
 0x23d   :  { %3023 = vmatpush3.msra.mxu0 %v3735_v6  ;;  %3054 = vmatprep.mubr.msk.f32.mxu0 %vm3662_vm0, %v3661_v5  ;;  %v4351_v6 = vld [vmem:[%s5524_s9] ss:$0 sm:$0xff] }
 0x23e   :  { %3024 = vmatprep.subr.mxu0 %v3661_v5 }
 0x23f   :  { %3025 = vmatpush3.msra.mxu0 %v3740_v7 }
 0x240   :  { %3026 = vmatprep.subr.mxu0 %v3661_v5 }
 0x241   :  { %3027 = vmatpush3.msra.mxu0 %v3754_v10 }
 0x242   :  { %3028 = vmatprep.subr.mxu0 %v3661_v5 }
 0x243   :  { %3029 = vmatpush3.msra.mxu0 %v3769_v13 }
 0x244   :  { %3030 = vmatprep.subr.mxu0 %v3661_v5 }
 0x245   :  { %3031 = vmatpush3.msra.mxu0 %v3777_v14 }
 0x246   :  { %3032 = vmatprep.subr.mxu0 %v3661_v5 }
 0x247   :  { %3033 = vmatpush3.msra.mxu0 %v3791_v17 }
 0x248   :  { %3034 = vmatprep.subr.mxu0 %v3661_v5 }
 0x249   :  { %3035 = vmatpush3.msra.mxu0 %v3804_v20 }
 0x24a   :  { %3036 = vmatprep.subr.mxu0 %v3661_v5 }
 0x24b   :  { %3037 = vmatpush3.msra.mxu0 %v3810_v21 }
 0x24c   :  { %3038 = vmatprep.subr.mxu0 %v3661_v5 }
 0x24d   :  { %3039 = vmatpush3.msra.mxu0 %v3824_v24 }
 0x24e   :  { %3040 = vmatprep.subr.mxu0 %v3661_v5 }
 0x24f   :  { %3041 = vmatpush3.msra.mxu0 %v3837_v27 }
 0x250   :  { %3042 = vmatprep.subr.mxu0 %v3661_v5 }
 0x251   :  { %3043 = vmatpush3.msra.mxu0 %v3843_v28  ;;  %v5532_v28 = vsub.f32 %v4225_v52, %v4228_v63  ;;  %v4489_v63 = vld [vmem:[%s5517_s4 + $0x30] sm:$0xff] }
 0x252   :  { %3044 = vmatprep.subr.mxu0 %v3661_v5 }
 0x253   :  { %3045 = vmatpush3.msra.mxu0 %v3850_v29 }
 0x254   :  { %3046 = vmatprep.subr.mxu0 %v3661_v5 }
 0x255   :  { %3047 = vmatpush3.msra.mxu0 %v3857_v30 }
 0x256   :  { %3048 = vmatprep.subr.mxu0 %v3661_v5 }
 0x257   :  { %3049 = vmatpush3.msra.mxu0 %v3864_v31 }
 0x258   :  { %3050 = vmatprep.subr.mxu0 %v3661_v5 }
 0x259   :  { %3051 = vmatpush3.msra.mxu0 %v3871_v32 }
 0x25a   :  { %3052 = vmatprep.subr.mxu0 %v3661_v5 }
 0x25b   :  { %3053 = vmatpush3.msra.mxu0 %v3878_v33 }
 0x25c   :  { %3055 = vmatmul.mubr.f32.vlgmr.msra.gmra.mxu0 %v3986_v22  ;;  %3092 = vmatprep.subr.mxu0 %v3661_v5 }
 0x25d   :  { %3093 = vmatpush3.msra.mxu0 %v4027_v11  ;;  %3124 = vmatprep.mubr.msk.f32.mxu0 %vm3662_vm0, %v3661_v5 }
 0x25e   :  { %3094 = vmatprep.subr.mxu0 %v3661_v5 }
 0x25f   :  { %3095 = vmatpush3.msra.mxu0 %v4032_v3 }
 0x260   :  { %3096 = vmatprep.subr.mxu0 %v3661_v5 }
 0x261   :  { %3097 = vmatpush3.msra.mxu0 %v4039_v12 }
 0x262   :  { %3098 = vmatprep.subr.mxu0 %v3661_v5 }
 0x263   :  { %3099 = vmatpush3.msra.mxu0 %v4046_v15 }
 0x264   :  { %3100 = vmatprep.subr.mxu0 %v3661_v5 }
 0x265   :  { %3101 = vmatpush3.msra.mxu0 %v4053_v16 }
 0x266   :  { %3102 = vmatprep.subr.mxu0 %v3661_v5 }
 0x267   :  { %3103 = vmatpush3.msra.mxu0 %v4060_v19 }
 0x268   :  { %3104 = vmatprep.subr.mxu0 %v3661_v5 }
 0x269   :  { %3105 = vmatpush3.msra.mxu0 %v4067_v23 }
 0x26a   :  { %3106 = vmatprep.subr.mxu0 %v3661_v5 }
 0x26b   :  { %3107 = vmatpush3.msra.mxu0 %v4074_v25  ;;  %v4440_v25 = vld [vmem:[%s5517_s4 + $0x68] sm:$0xff] }
 0x26c   :  { %3108 = vmatprep.subr.mxu0 %v3661_v5 }
 0x26d   :  { %3109 = vmatpush3.msra.mxu0 %v4081_v26  ;;  %v4447_v26 = vld [vmem:[%s5517_s4 + $0x60] sm:$0xff] }
 0x26e   :  { %3110 = vmatprep.subr.mxu0 %v3661_v5 }
 0x26f   :  { %3111 = vmatpush3.msra.mxu0 %v4088_v47  ;;  %v4454_v47 = vld [vmem:[%s5517_s4 + $0x58] sm:$0xff] }
 0x270   :  { %3112 = vmatprep.subr.mxu0 %v3661_v5 }
 0x271   :  { %3113 = vmatpush3.msra.mxu0 %v4095_v48  ;;  %v4461_v48 = vld [vmem:[%s5517_s4 + $0x50] sm:$0xff] }
 0x272   :  { %3114 = vmatprep.subr.mxu0 %v3661_v5 }
 0x273   :  { %3115 = vmatpush3.msra.mxu0 %v4102_v50  ;;  %v4468_v50 = vld [vmem:[%s5517_s4 + $0x48] sm:$0xff] }
 0x274   :  { %3116 = vmatprep.subr.mxu0 %v3661_v5 }
 0x275   :  { %3117 = vmatpush3.msra.mxu0 %v4186_v59  ;;  %v4496_v59 = vld [vmem:[%s5517_s4 + $0x28] sm:$0xff] }
 0x276   :  { %3118 = vmatprep.subr.mxu0 %v3661_v5 }
 0x277   :  { %3119 = vmatpush3.msra.mxu0 %v4194_v0  ;;  %v4503_v0 = vld [vmem:[%s5517_s4 + $0x20] sm:$0xff] }
 0x278   :  { %3120 = vmatprep.subr.mxu0 %v3661_v5 }
 0x279   :  { %3121 = vmatpush3.msra.mxu0 %v4203_v54  ;;  %v4510_v54 = vld [vmem:[%s5517_s4 + $0x18] sm:$0xff] }
 0x27a   :  { %3122 = vmatprep.subr.mxu0 %v3661_v5 }
 0x27b   :  { %3123 = vmatpush3.msra.mxu0 %v4212_v1 }
 0x27c   :  { %3162 = vmatprep.subr.mxu0 %v3661_v5 }
 0x2da   :  { %v466_v7 = vpop.f32.mrf.mxu0 }
 0x2db   :  { %v4354_v10 = vadd.f32 %v4351_v6, %v466_v7 }
 0x2dc   :  { %v2916_v13 = vpop.f32.mrf.mxu0 }
 0x2dd   :  { %v471_v14 = vmax.f32 %v4354_v10, 0.0 }
 0x2df   :  { %v4357_v17 = vfloor.f32 %v471_v14 }
 0x2e1   :  { %v473_v20 = vsub.f32 %v4354_v10, %v4357_v17  ;;  %474 = vst [vmem:[%s5525_s10] sm:$0xff] %v4357_v17  ;;  %v4707_v17 = vld [vmem:[%s5521_s8 + $0x48] sm:$0xff] }
 0x2fc   :  { %v651_v21 = vpop.f32.mrf.mxu0 }
 0x2fd   :  { %v652_v24 = vadd.f32 %v4222_v49, %v651_v21  ;;  %v4725_v21 = vld [vmem:[%s5521_s8 + $0x38] sm:$0xff] }
 0x2fe   :  { %v2986_v27 = vpop.f32.mrf.mxu0 }
 0x2ff   :  { %v4369_v29 = vadd.f32 %v652_v24, %v5532_v28  ;;  %v4734_v24 = vld [vmem:[%s5521_s8 + $0x30] sm:$0xff]  ;;  %v4743_v27 = vld [vmem:[%s5521_s8 + $0x28] sm:$0xff]  ;;  %v4752_v28 = vld [vmem:[%s5521_s8 + $0x20] sm:$0xff] }
 0x301   :  { %v656_v30 = vmax.f32 %v4369_v29, 0.0 }
 0x303   :  { %v4372_v22 = vfloor.f32 %v656_v30  ;;  %v4774_v30 = vld [vmem:[%s5521_s8 + $0x10] sm:$0xff] }
 0x305   :  { %3020 = vmatmul.mubr.f32.vlgmr.msra.gmra.mxu1 %v4372_v22  ;;  %v658_v55 = vsub.f32 %v4369_v29, %v4372_v22  ;;  %v4765_v29 = vld [vmem:[%s5521_s8 + $0x18] sm:$0xff]  ;;  %v4783_v22 = vld [vmem:[%s5521_s8 + $0x8] sm:$0xff] }
 0x306   :  { %3058 = vmatpush3.msra.mxu1 %v3887_v34  ;;  %3089 = vmatprep.mubr.msk.f32.mxu1 %vm3662_vm0, %v3661_v5 }
 0x307   :  { %3059 = vmatprep.subr.mxu1 %v3661_v5 }
 0x308   :  { %3060 = vmatpush3.msra.mxu1 %v3892_v35 }
 0x309   :  { %3061 = vmatprep.subr.mxu1 %v3661_v5 }
 0x30a   :  { %3062 = vmatpush3.msra.mxu1 %v3899_v36 }
 0x30b   :  { %3063 = vmatprep.subr.mxu1 %v3661_v5 }
 0x30c   :  { %3064 = vmatpush3.msra.mxu1 %v3906_v37 }
 0x30d   :  { %3065 = vmatprep.subr.mxu1 %v3661_v5 }
 0x30e   :  { %3066 = vmatpush3.msra.mxu1 %v3913_v38 }
 0x30f   :  { %3067 = vmatprep.subr.mxu1 %v3661_v5 }
 0x310   :  { %3068 = vmatpush3.msra.mxu1 %v3920_v39 }
 0x311   :  { %3069 = vmatprep.subr.mxu1 %v3661_v5 }
 0x312   :  { %3070 = vmatpush3.msra.mxu1 %v3927_v40 }
 0x313   :  { %3071 = vmatprep.subr.mxu1 %v3661_v5 }
 0x314   :  { %3072 = vmatpush3.msra.mxu1 %v3934_v41 }
 0x315   :  { %3073 = vmatprep.subr.mxu1 %v3661_v5 }
 0x316   :  { %3074 = vmatpush3.msra.mxu1 %v3941_v42 }
 0x317   :  { %3075 = vmatprep.subr.mxu1 %v3661_v5 }
 0x318   :  { %3076 = vmatpush3.msra.mxu1 %v3948_v43 }
 0x319   :  { %3077 = vmatprep.subr.mxu1 %v3661_v5 }
 0x31a   :  { %3078 = vmatpush3.msra.mxu1 %v3955_v44 }
 0x31b   :  { %3079 = vmatprep.subr.mxu1 %v3661_v5 }
 0x31c   :  { %v836_v11 = vpop.f32.mrf.mxu0  ;;  %3080 = vmatpush3.msra.mxu1 %v3962_v45 }
 0x31d   :  { %v837_v3 = vadd.f32 %v4111_v51, %v836_v11  ;;  %3081 = vmatprep.subr.mxu1 %v3661_v5 }
 0x31e   :  { %v3056_v12 = vpop.f32.mrf.mxu0  ;;  %3082 = vmatpush3.msra.mxu1 %v3969_v46  ;;  %v4421_v46 = vld [vmem:[%s5517_s4 + $0x78] sm:$0xff] }
 0x31f   :  { %v4408_v15 = vadd.f32 %v837_v3, %v568_v4  ;;  %3083 = vmatprep.subr.mxu1 %v3661_v5 }
 0x320   :  { %3084 = vmatpush3.msra.mxu1 %v4006_v60 }
 0x321   :  { %v841_v16 = vmax.f32 %v4408_v15, 0.0  ;;  %3085 = vmatprep.subr.mxu1 %v3661_v5 }
 0x322   :  { %3086 = vmatpush3.msra.mxu1 %v4013_v8 }
 0x323   :  { %v4415_v19 = vfloor.f32 %v841_v16  ;;  %3087 = vmatprep.subr.mxu1 %v3661_v5 }
 0x324   :  { %3088 = vmatpush3.msra.mxu1 %v4020_v9 }
 0x325   :  { %3090 = vmatmul.mubr.f32.vlgmr.msra.gmra.mxu1 %v4415_v19  ;;  %3127 = vmatprep.subr.mxu1 %v3661_v5  ;;  %v843_v23 = vsub.f32 %v4408_v15, %v4415_v19 }
 0x326   :  { %3128 = vmatpush3.msra.mxu1 %v4421_v46  ;;  %3159 = vmatprep.mubr.msk.f32.mxu1 %vm3662_vm0, %v3661_v5 }
 0x327   :  { %3129 = vmatprep.subr.mxu1 %v3661_v5 }
 0x328   :  { %3130 = vmatpush3.msra.mxu1 %v4429_v62 }
 0x329   :  { %3131 = vmatprep.subr.mxu1 %v3661_v5 }
 0x32a   :  { %3132 = vmatpush3.msra.mxu1 %v4440_v25 }
 0x32b   :  { %3133 = vmatprep.subr.mxu1 %v3661_v5 }
 0x32c   :  { %3134 = vmatpush3.msra.mxu1 %v4447_v26 }
 0x32d   :  { %3135 = vmatprep.subr.mxu1 %v3661_v5 }
 0x32e   :  { %3136 = vmatpush3.msra.mxu1 %v4454_v47 }
 0x32f   :  { %3137 = vmatprep.subr.mxu1 %v3661_v5 }
 0x330   :  { %3138 = vmatpush3.msra.mxu1 %v4461_v48 }
 0x331   :  { %3139 = vmatprep.subr.mxu1 %v3661_v5 }
 0x332   :  { %3140 = vmatpush3.msra.mxu1 %v4468_v50 }
 0x333   :  { %3141 = vmatprep.subr.mxu1 %v3661_v5 }
 0x334   :  { %3142 = vmatpush3.msra.mxu1 %v4475_v18 }
 0x335   :  { %3143 = vmatprep.subr.mxu1 %v3661_v5 }
 0x336   :  { %3144 = vmatpush3.msra.mxu1 %v4482_v61 }
 0x337   :  { %3145 = vmatprep.subr.mxu1 %v3661_v5 }
 0x338   :  { %3146 = vmatpush3.msra.mxu1 %v4489_v63 }
 0x339   :  { %3147 = vmatprep.subr.mxu1 %v3661_v5 }
 0x33a   :  { %3148 = vmatpush3.msra.mxu1 %v4496_v59 }
 0x33b   :  { %3149 = vmatprep.subr.mxu1 %v3661_v5 }
 0x33c   :  { %3150 = vmatpush3.msra.mxu1 %v4503_v0 }
 0x33d   :  { %3151 = vmatprep.subr.mxu1 %v3661_v5 }
 0x33e   :  { %3152 = vmatpush3.msra.mxu1 %v4510_v54 }
 0x33f   :  { %3153 = vmatprep.subr.mxu1 %v3661_v5 }
 0x340   :  { %3154 = vmatpush3.msra.mxu1 %v3864_v31 }
 0x341   :  { %3155 = vmatprep.subr.mxu1 %v3661_v5 }
 0x342   :  { %3156 = vmatpush3.msra.mxu1 %v3871_v32 }
 0x343   :  { %3157 = vmatprep.subr.mxu1 %v3661_v5 }
 0x344   :  { %3158 = vmatpush3.msra.mxu1 %v3878_v33 }
 0x345   :  { %3160 = vmatmul.mubr.f32.vlgmr.msra.gmra.mxu1 %v3989_v53  ;;  %3197 = vmatprep.subr.mxu1 %v3661_v5 }
 0x346   :  { %3229 = vmatprep.mubr.msk.f32.mxu1 %vm3662_vm0, %v3661_v5 }
 0x3c5   :  { %v741_v1 = vpop.f32.mrf.mxu1 }
 0x3c6   :  { %v742_v52 = vadd.f32 %v4351_v6, %v741_v1 }
 0x3c7   :  { %v3021_v56 = vpop.f32.mrf.mxu1 }
 0x3c8   :  { %v4529_v31 = vadd.f32 %v742_v52, %v473_v20  ;;  %v4716_v20 = vld [vmem:[%s5521_s8 + $0x40] sm:$0xff] }
 0x3ca   :  { %v746_v32 = vmax.f32 %v4529_v31, 0.0 }
 0x3cc   :  { %v4532_v57 = vfloor.f32 %v746_v32 }
 0x3ce   :  { %749 = vst [vmem:[%s5525_s10 + $0x8] sm:$0xff] %v4532_v57  ;;  %v748_v33 = vsub.f32 %v4529_v31, %v4532_v57 }
 0x3e5   :  { %v926_v53 = vpop.f32.mrf.mxu1 }
 0x3e6   :  { %v927_v2 = vadd.f32 %v4222_v49, %v926_v53 }
 0x3e7   :  { %v3091_v4 = vpop.f32.mrf.mxu1 }
 0x3e8   :  { %v4544_v7 = vadd.f32 %v927_v2, %v658_v55  ;;  %v4792_v55 = vld [vmem:[%s5521_s8] sm:$0xff]  ;;  %v4843_v2 = vld [vmem:[%s5518_s6 + $0x68] sm:$0xff] }
 0x3e9   :  { %v4850_v4 = vld [vmem:[%s5518_s6 + $0x60] sm:$0xff] }
 0x3ea   :  { %v931_v10 = vmax.f32 %v4544_v7, 0.0 }
 0x3ec   :  { %v4547_v13 = vfloor.f32 %v931_v10  ;;  %v4864_v10 = vld [vmem:[%s5518_s6 + $0x50] sm:$0xff] }
 0x3ee   :  { %3125 = vmatmul.mubr.f32.vlgmr.msra.gmra.mxu0 %v4547_v13  ;;  %v933_v14 = vsub.f32 %v4544_v7, %v4547_v13  ;;  %v4857_v7 = vld [vmem:[%s5518_s6 + $0x58] sm:$0xff]  ;;  %v4871_v13 = vld [vmem:[%s5518_s6 + $0x48] sm:$0xff] }
 0x3ef   :  { %3163 = vmatpush3.msra.mxu0 %v3887_v34  ;;  %3194 = vmatprep.mubr.msk.f32.mxu0 %vm3662_vm0, %v3661_v5  ;;  %v4579_v34 = vld [vmem:[%s5518_s6 + $0x18] sm:$0xff] }
 0x3f0   :  { %3164 = vmatprep.subr.mxu0 %v3661_v5 }
 0x3f1   :  { %3165 = vmatpush3.msra.mxu0 %v3892_v35 }
 0x3f2   :  { %3166 = vmatprep.subr.mxu0 %v3661_v5 }
 0x3f3   :  { %3167 = vmatpush3.msra.mxu0 %v3899_v36 }
 0x3f4   :  { %3168 = vmatprep.subr.mxu0 %v3661_v5 }
 0x3f5   :  { %3169 = vmatpush3.msra.mxu0 %v3906_v37 }
 0x3f6   :  { %3170 = vmatprep.subr.mxu0 %v3661_v5 }
 0x3f7   :  { %3171 = vmatpush3.msra.mxu0 %v3913_v38 }
 0x3f8   :  { %3172 = vmatprep.subr.mxu0 %v3661_v5 }
 0x3f9   :  { %3173 = vmatpush3.msra.mxu0 %v3920_v39 }
 0x3fa   :  { %3174 = vmatprep.subr.mxu0 %v3661_v5 }
 0x3fb   :  { %3175 = vmatpush3.msra.mxu0 %v3927_v40 }
 0x3fc   :  { %3176 = vmatprep.subr.mxu0 %v3661_v5 }
 0x3fd   :  { %3177 = vmatpush3.msra.mxu0 %v3934_v41 }
 0x3fe   :  { %3178 = vmatprep.subr.mxu0 %v3661_v5 }
 0x3ff   :  { %3179 = vmatpush3.msra.mxu0 %v3941_v42  ;;  %v4632_v42 = vld [vmem:[%s5517_s4 + $0x10] sm:$0xff] }
 0x400   :  { %3180 = vmatprep.subr.mxu0 %v3661_v5 }
 0x401   :  { %3181 = vmatpush3.msra.mxu0 %v3948_v43  ;;  %v4639_v43 = vld [vmem:[%s5517_s4 + $0x8] sm:$0xff] }
 0x402   :  { %3182 = vmatprep.subr.mxu0 %v3661_v5 }
 0x403   :  { %3183 = vmatpush3.msra.mxu0 %v3955_v44  ;;  %v4646_v44 = vld [vmem:[%s5517_s4] sm:$0xff] }
 0x404   :  { %3184 = vmatprep.subr.mxu0 %v3661_v5 }
 0x405   :  { %3185 = vmatpush3.msra.mxu0 %v3962_v45  ;;  %v1111_v35 = vpop.f32.mrf.mxu1  ;;  %v4658_v45 = vld [vmem:[%s5521_s8 + $0x78] sm:$0xff] }
 0x406   :  { %v1112_v36 = vadd.f32 %v4111_v51, %v1111_v35  ;;  %3186 = vmatprep.subr.mxu0 %v3661_v5  ;;  %3198 = vmatpush3.msra.mxu1 %v4658_v45  ;;  %v4698_v51 = vld [vmem:[%s5521_s8 + $0x50] sm:$0xff]  ;;  %v4885_v35 = vld [vmem:[%s5518_s6 + $0x38] sm:$0xff] }
 0x407   :  { %3187 = vmatpush3.msra.mxu0 %v4579_v34  ;;  %v3161_v37 = vpop.f32.mrf.mxu1  ;;  %3199 = vmatprep.subr.mxu1 %v3661_v5 }
 0x408   :  { %v4588_v38 = vadd.f32 %v1112_v36, %v843_v23  ;;  %3188 = vmatprep.subr.mxu0 %v3661_v5  ;;  %v4892_v36 = vld [vmem:[%s5518_s6 + $0x30] sm:$0xff]  ;;  %v4899_v37 = vld [vmem:[%s5518_s6 + $0x28] sm:$0xff] }
 0x409   :  { %3189 = vmatpush3.msra.mxu0 %v4006_v60  ;;  %v4663_v60 = vld [vmem:[%s5521_s8 + $0x70] sm:$0xff] }
 0x40a   :  { %v1116_v39 = vmax.f32 %v4588_v38, 0.0  ;;  %3190 = vmatprep.subr.mxu0 %v3661_v5  ;;  %3200 = vmatpush3.msra.mxu1 %v4663_v60 }
 0x40b   :  { %3191 = vmatpush3.msra.mxu0 %v4013_v8  ;;  %3201 = vmatprep.subr.mxu1 %v3661_v5  ;;  %v4680_v8 = vld [vmem:[%s5521_s8 + $0x60] sm:$0xff] }
 0x40c   :  { %v4595_v40 = vfloor.f32 %v1116_v39  ;;  %3192 = vmatprep.subr.mxu0 %v3661_v5  ;;  %v4906_v39 = vld [vmem:[%s5518_s6 + $0x20] sm:$0xff] }
 0x40d   :  { %3193 = vmatpush3.msra.mxu0 %v4020_v9  ;;  %v4689_v9 = vld [vmem:[%s5521_s8 + $0x58] sm:$0xff] }
 0x40e   :  { %3232 = vmatprep.subr.mxu0 %v3661_v5  ;;  %3195 = vmatmul.mubr.f32.vlgmr.msra.gmra.mxu0 %v4595_v40  ;;  %v1118_v41 = vsub.f32 %v4588_v38, %v4595_v40 }
 0x40f   :  { %3233 = vmatpush3.msra.mxu0 %v4421_v46  ;;  %3264 = vmatprep.mubr.msk.f32.mxu0 %vm3662_vm0, %v3661_v5 }
 0x410   :  { %3234 = vmatprep.subr.mxu0 %v3661_v5 }
 0x411   :  { %3235 = vmatpush3.msra.mxu0 %v4429_v62 }
 0x412   :  { %3236 = vmatprep.subr.mxu0 %v3661_v5 }
 0x413   :  { %3237 = vmatpush3.msra.mxu0 %v4440_v25 }
 0x414   :  { %3238 = vmatprep.subr.mxu0 %v3661_v5 }
 0x415   :  { %3239 = vmatpush3.msra.mxu0 %v4447_v26 }
 0x416   :  { %3240 = vmatprep.subr.mxu0 %v3661_v5 }
 0x417   :  { %3241 = vmatpush3.msra.mxu0 %v4454_v47 }
 0x418   :  { %3242 = vmatprep.subr.mxu0 %v3661_v5 }
 0x419   :  { %3243 = vmatpush3.msra.mxu0 %v4461_v48 }
 0x41a   :  { %3244 = vmatprep.subr.mxu0 %v3661_v5 }
 0x41b   :  { %3245 = vmatpush3.msra.mxu0 %v4468_v50 }
 0x41c   :  { %3246 = vmatprep.subr.mxu0 %v3661_v5 }
 0x41d   :  { %3247 = vmatpush3.msra.mxu0 %v4475_v18 }
 0x41e   :  { %3248 = vmatprep.subr.mxu0 %v3661_v5 }
 0x41f   :  { %3249 = vmatpush3.msra.mxu0 %v4482_v61 }
 0x420   :  { %3250 = vmatprep.subr.mxu0 %v3661_v5 }
 0x421   :  { %3251 = vmatpush3.msra.mxu0 %v4489_v63 }
 0x422   :  { %3252 = vmatprep.subr.mxu0 %v3661_v5 }
 0x423   :  { %3253 = vmatpush3.msra.mxu0 %v4496_v59 }
 0x424   :  { %3254 = vmatprep.subr.mxu0 %v3661_v5 }
 0x425   :  { %3255 = vmatpush3.msra.mxu0 %v4503_v0 }
 0x426   :  { %3256 = vmatprep.subr.mxu0 %v3661_v5 }
 0x427   :  { %3257 = vmatpush3.msra.mxu0 %v4510_v54 }
 0x428   :  { %3258 = vmatprep.subr.mxu0 %v3661_v5 }
 0x429   :  { %3259 = vmatpush3.msra.mxu0 %v4632_v42 }
 0x42a   :  { %3260 = vmatprep.subr.mxu0 %v3661_v5 }
 0x42b   :  { %3261 = vmatpush3.msra.mxu0 %v4639_v43 }
 0x42c   :  { %3262 = vmatprep.subr.mxu0 %v3661_v5 }
 0x42d   :  { %3263 = vmatpush3.msra.mxu0 %v4646_v44 }
 0x42e   :  { %3265 = vmatmul.mubr.f32.vlgmr.msra.gmra.mxu0 %v3992_v58  ;;  %3302 = vmatprep.subr.mxu0 %v3661_v5  ;;  %v4671_v58 = vld [vmem:[%s5521_s8 + $0x68] sm:$0xff] }
 0x42f   :  { %3334 = vmatprep.mubr.msk.f32.mxu0 %vm3662_vm0, %v3661_v5  ;;  %3303 = vmatpush3.msra.mxu0 %v4658_v45 }
 0x430   :  { %3304 = vmatprep.subr.mxu0 %v3661_v5  ;;  %3202 = vmatpush3.msra.mxu1 %v4671_v58 }
 0x431   :  { %3305 = vmatpush3.msra.mxu0 %v4663_v60  ;;  %3203 = vmatprep.subr.mxu1 %v3661_v5 }
 0x432   :  { %3306 = vmatprep.subr.mxu0 %v3661_v5  ;;  %3204 = vmatpush3.msra.mxu1 %v4680_v8 }
 0x433   :  { %3307 = vmatpush3.msra.mxu0 %v4671_v58  ;;  %3205 = vmatprep.subr.mxu1 %v3661_v5 }
 0x434   :  { %3308 = vmatprep.subr.mxu0 %v3661_v5  ;;  %3206 = vmatpush3.msra.mxu1 %v4689_v9 }
 0x435   :  { %3309 = vmatpush3.msra.mxu0 %v4680_v8  ;;  %3207 = vmatprep.subr.mxu1 %v3661_v5 }
 0x436   :  { %3310 = vmatprep.subr.mxu0 %v3661_v5  ;;  %3208 = vmatpush3.msra.mxu1 %v4698_v51 }
 0x437   :  { %3311 = vmatpush3.msra.mxu0 %v4689_v9  ;;  %3209 = vmatprep.subr.mxu1 %v3661_v5 }
 0x438   :  { %3312 = vmatprep.subr.mxu0 %v3661_v5  ;;  %3210 = vmatpush3.msra.mxu1 %v4707_v17 }
 0x439   :  { %3313 = vmatpush3.msra.mxu0 %v4698_v51  ;;  %3211 = vmatprep.subr.mxu1 %v3661_v5 }
 0x43a   :  { %3314 = vmatprep.subr.mxu0 %v3661_v5  ;;  %3212 = vmatpush3.msra.mxu1 %v4716_v20 }
 0x43b   :  { %3315 = vmatpush3.msra.mxu0 %v4707_v17  ;;  %3213 = vmatprep.subr.mxu1 %v3661_v5 }
 0x43c   :  { %3316 = vmatprep.subr.mxu0 %v3661_v5  ;;  %3214 = vmatpush3.msra.mxu1 %v4725_v21 }
 0x43d   :  { %3317 = vmatpush3.msra.mxu0 %v4716_v20  ;;  %3215 = vmatprep.subr.mxu1 %v3661_v5 }
 0x43e   :  { %3318 = vmatprep.subr.mxu0 %v3661_v5  ;;  %3216 = vmatpush3.msra.mxu1 %v4734_v24 }
 0x43f   :  { %3319 = vmatpush3.msra.mxu0 %v4725_v21  ;;  %3217 = vmatprep.subr.mxu1 %v3661_v5 }
 0x440   :  { %3320 = vmatprep.subr.mxu0 %v3661_v5  ;;  %3218 = vmatpush3.msra.mxu1 %v4743_v27 }
 0x441   :  { %3321 = vmatpush3.msra.mxu0 %v4734_v24  ;;  %3219 = vmatprep.subr.mxu1 %v3661_v5 }
 0x442   :  { %3322 = vmatprep.subr.mxu0 %v3661_v5  ;;  %3220 = vmatpush3.msra.mxu1 %v4752_v28 }
 0x443   :  { %3323 = vmatpush3.msra.mxu0 %v4743_v27  ;;  %3221 = vmatprep.subr.mxu1 %v3661_v5 }
 0x444   :  { %3324 = vmatprep.subr.mxu0 %v3661_v5  ;;  %3222 = vmatpush3.msra.mxu1 %v4765_v29 }
 0x445   :  { %3325 = vmatpush3.msra.mxu0 %v4752_v28  ;;  %3223 = vmatprep.subr.mxu1 %v3661_v5 }
 0x446   :  { %3326 = vmatprep.subr.mxu0 %v3661_v5  ;;  %3224 = vmatpush3.msra.mxu1 %v4774_v30 }
 0x447   :  { %3327 = vmatpush3.msra.mxu0 %v4765_v29  ;;  %3225 = vmatprep.subr.mxu1 %v3661_v5 }
 0x448   :  { %3328 = vmatprep.subr.mxu0 %v3661_v5  ;;  %3226 = vmatpush3.msra.mxu1 %v4783_v22 }
 0x449   :  { %3329 = vmatpush3.msra.mxu0 %v4774_v30  ;;  %3227 = vmatprep.subr.mxu1 %v3661_v5 }
 0x44a   :  { %3330 = vmatprep.subr.mxu0 %v3661_v5  ;;  %3228 = vmatpush3.msra.mxu1 %v4792_v55 }
 0x44b   :  { %3331 = vmatpush3.msra.mxu0 %v4783_v22  ;;  %3267 = vmatprep.subr.mxu1 %v3661_v5 }
 0x44c   :  { %3332 = vmatprep.subr.mxu0 %v3661_v5 }
 0x44d   :  { %3333 = vmatpush3.msra.mxu0 %v4792_v55 }
 0x44e   :  { %3372 = vmatprep.subr.mxu0 %v3661_v5 }
 0x4ae   :  { %v1016_v11 = vpop.f32.mrf.mxu0 }
 0x4af   :  { %v1017_v3 = vadd.f32 %v4351_v6, %v1016_v11 }
 0x4b0   :  { %v3126_v12 = vpop.f32.mrf.mxu0 }
 0x4b1   :  { %v4803_v15 = vadd.f32 %v1017_v3, %v748_v33  ;;  %v4826_v33 = vld [vmem:[%s5518_s6 + $0x78] sm:$0xff]  ;;  %v4914_v3 = vld [vmem:[%s5522_s5] ss:$0 sm:$0xff] }
 0x4b3   :  { %v1021_v16 = vmax.f32 %v4803_v15, 0.0 }
 0x4b5   :  { %v4806_v19 = vfloor.f32 %v1021_v16  ;;  %v4921_v16 = vld [vmem:[%s5518_s6 + $0x10] sm:$0xff] }
 0x4b7   :  { %1024 = vst [vmem:[%s5525_s10 + $0x10] sm:$0xff] %v4806_v19  ;;  %v1023_v23 = vsub.f32 %v4803_v15, %v4806_v19  ;;  %v5165_v15 = vld [vmem:[%s5517_s4 + $0x30] sm:$0xff]  ;;  %v5172_v19 = vld [vmem:[%s5517_s4 + $0x28] sm:$0xff] }
 0x4ce   :  { %v1201_v1 = vpop.f32.mrf.mxu0 }
 0x4cf   :  { %v1202_v52 = vadd.f32 %v4222_v49, %v1201_v1  ;;  %v4832_v49 = vld [vmem:[%s5518_s6 + $0x70] sm:$0xff] }
 0x4d0   :  { %v3196_v56 = vpop.f32.mrf.mxu0 }
 0x4d1   :  { %v4818_v31 = vadd.f32 %v1202_v52, %v933_v14  ;;  %v4878_v14 = vld [vmem:[%s5518_s6 + $0x40] sm:$0xff]  ;;  %v4933_v56 = vld [vmem:[%s5518_s6 + $0x8] sm:$0xff] }
 0x4d3   :  { %v1206_v32 = vmax.f32 %v4818_v31, 0.0 }
 0x4d5   :  { %v4821_v57 = vfloor.f32 %v1206_v32 }
 0x4d7   :  { %3230 = vmatmul.mubr.f32.vlgmr.msra.gmra.mxu1 %v4821_v57  ;;  %v1208_v53 = vsub.f32 %v4818_v31, %v4821_v57  ;;  %v5186_v31 = vld [vmem:[%s5517_s4 + $0x18] sm:$0xff]  ;;  %v5534_v57 = vld [vmem:[#allocation3_spill] sm:$0xff] }
 0x4d8   :  { %3268 = vmatpush3.msra.mxu1 %v4826_v33  ;;  %3299 = vmatprep.mubr.msk.f32.mxu1 %vm3662_vm0, %v3661_v5 }
 0x4d9   :  { %3269 = vmatprep.subr.mxu1 %v3661_v5 }
 0x4da   :  { %3270 = vmatpush3.msra.mxu1 %v4832_v49 }
 0x4db   :  { %3271 = vmatprep.subr.mxu1 %v3661_v5 }
 0x4dc   :  { %3272 = vmatpush3.msra.mxu1 %v4843_v2 }
 0x4dd   :  { %3273 = vmatprep.subr.mxu1 %v3661_v5 }
 0x4de   :  { %3274 = vmatpush3.msra.mxu1 %v4850_v4 }
 0x4df   :  { %3275 = vmatprep.subr.mxu1 %v3661_v5 }
 0x4e0   :  { %3276 = vmatpush3.msra.mxu1 %v4857_v7 }
 0x4e1   :  { %3277 = vmatprep.subr.mxu1 %v3661_v5 }
 0x4e2   :  { %3278 = vmatpush3.msra.mxu1 %v4864_v10 }
 0x4e3   :  { %3279 = vmatprep.subr.mxu1 %v3661_v5 }
 0x4e4   :  { %3280 = vmatpush3.msra.mxu1 %v4871_v13 }
 0x4e5   :  { %3281 = vmatprep.subr.mxu1 %v3661_v5 }
 0x4e6   :  { %3282 = vmatpush3.msra.mxu1 %v4878_v14 }
 0x4e7   :  { %3283 = vmatprep.subr.mxu1 %v3661_v5 }
 0x4e8   :  { %3284 = vmatpush3.msra.mxu1 %v4885_v35 }
 0x4e9   :  { %3285 = vmatprep.subr.mxu1 %v3661_v5 }
 0x4ea   :  { %3286 = vmatpush3.msra.mxu1 %v4892_v36 }
 0x4eb   :  { %3287 = vmatprep.subr.mxu1 %v3661_v5 }
 0x4ec   :  { %3288 = vmatpush3.msra.mxu1 %v4899_v37 }
 0x4ed   :  { %3289 = vmatprep.subr.mxu1 %v3661_v5 }
 0x4ee   :  { %v1386_v11 = vpop.f32.mrf.mxu0  ;;  %3290 = vmatpush3.msra.mxu1 %v4906_v39 }
 0x4ef   :  { %v1387_v12 = vadd.f32 %v4914_v3, %v1386_v11  ;;  %3291 = vmatprep.subr.mxu1 %v3661_v5  ;;  %v4941_v11 = vld [vmem:[%s5518_s6] sm:$0xff] }
 0x4f0   :  { %v3266_v1 = vpop.f32.mrf.mxu0  ;;  %3292 = vmatpush3.msra.mxu1 %v4579_v34 }
 0x4f1   :  { %v4927_v52 = vadd.f32 %v1387_v12, %v1118_v41  ;;  %3293 = vmatprep.subr.mxu1 %v3661_v5 }
 0x4f2   :  { %3294 = vmatpush3.msra.mxu1 %v4921_v16 }
 0x4f3   :  { %v1391_v32 = vmax.f32 %v4927_v52, 0.0  ;;  %3295 = vmatprep.subr.mxu1 %v3661_v5 }
 0x4f4   :  { %3296 = vmatpush3.msra.mxu1 %v4933_v56 }
 0x4f5   :  { %v4944_v38 = vfloor.f32 %v1391_v32  ;;  %3297 = vmatprep.subr.mxu1 %v3661_v5 }
 0x4f6   :  { %3298 = vmatpush3.msra.mxu1 %v4941_v11 }
 0x4f7   :  { %3300 = vmatmul.mubr.f32.vlgmr.msra.gmra.mxu1 %v4944_v38  ;;  %3337 = vmatprep.subr.mxu1 %v3661_v5  ;;  %v1393_v40 = vsub.f32 %v4927_v52, %v4944_v38 }
 0x4f8   :  { %3338 = vmatpush3.msra.mxu1 %v4421_v46  ;;  %3369 = vmatprep.mubr.msk.f32.mxu1 %vm3662_vm0, %v3661_v5  ;;  %v5533_v46 = vld [vmem:[#allocation2_spill] sm:$0xff] }
 0x4f9   :  { %3339 = vmatprep.subr.mxu1 %v3661_v5 }
 0x4fa   :  { %3340 = vmatpush3.msra.mxu1 %v4429_v62 }
 0x4fb   :  { %3341 = vmatprep.subr.mxu1 %v3661_v5 }
 0x4fc   :  { %3342 = vmatpush3.msra.mxu1 %v4440_v25 }
 0x4fd   :  { %3343 = vmatprep.subr.mxu1 %v3661_v5 }
 0x4fe   :  { %3344 = vmatpush3.msra.mxu1 %v4447_v26 }
 0x4ff   :  { %3345 = vmatprep.subr.mxu1 %v3661_v5 }
 0x500   :  { %3346 = vmatpush3.msra.mxu1 %v4454_v47 }
 0x501   :  { %3347 = vmatprep.subr.mxu1 %v3661_v5 }
 0x502   :  { %3348 = vmatpush3.msra.mxu1 %v4461_v48 }
 0x503   :  { %3349 = vmatprep.subr.mxu1 %v3661_v5 }
 0x504   :  { %3350 = vmatpush3.msra.mxu1 %v4468_v50 }
 0x505   :  { %3351 = vmatprep.subr.mxu1 %v3661_v5 }
 0x506   :  { %3352 = vmatpush3.msra.mxu1 %v4475_v18 }
 0x507   :  { %3353 = vmatprep.subr.mxu1 %v3661_v5 }
 0x508   :  { %3354 = vmatpush3.msra.mxu1 %v4482_v61 }
 0x509   :  { %3355 = vmatprep.subr.mxu1 %v3661_v5 }
 0x50a   :  { %3356 = vmatpush3.msra.mxu1 %v4489_v63 }
 0x50b   :  { %3357 = vmatprep.subr.mxu1 %v3661_v5 }
 0x50c   :  { %3358 = vmatpush3.msra.mxu1 %v4496_v59 }
 0x50d   :  { %3359 = vmatprep.subr.mxu1 %v3661_v5 }
 0x50e   :  { %3360 = vmatpush3.msra.mxu1 %v4503_v0 }
 0x50f   :  { %3361 = vmatprep.subr.mxu1 %v3661_v5 }
 0x510   :  { %3362 = vmatpush3.msra.mxu1 %v4510_v54 }
 0x511   :  { %3363 = vmatprep.subr.mxu1 %v3661_v5 }
 0x512   :  { %3364 = vmatpush3.msra.mxu1 %v4632_v42 }
 0x513   :  { %3365 = vmatprep.subr.mxu1 %v3661_v5 }
 0x514   :  { %3366 = vmatpush3.msra.mxu1 %v4639_v43 }
 0x515   :  { %3367 = vmatprep.subr.mxu1 %v3661_v5 }
 0x516   :  { %3368 = vmatpush3.msra.mxu1 %v4646_v44 }
 0x517   :  { %3370 = vmatmul.mubr.f32.vlgmr.msra.gmra.mxu1 %v5533_v46  ;;  %3407 = vmatprep.subr.mxu1 %v3661_v5 }
 0x518   :  { %3408 = vmatpush3.msra.mxu1 %v4658_v45  ;;  %3439 = vmatprep.mubr.msk.f32.mxu1 %vm3662_vm0, %v3661_v5 }
 0x519   :  { %3409 = vmatprep.subr.mxu1 %v3661_v5 }
 0x51a   :  { %3410 = vmatpush3.msra.mxu1 %v4663_v60 }
 0x51b   :  { %3411 = vmatprep.subr.mxu1 %v3661_v5 }
 0x51c   :  { %3412 = vmatpush3.msra.mxu1 %v4671_v58 }
 0x51d   :  { %3413 = vmatprep.subr.mxu1 %v3661_v5 }
 0x51e   :  { %3414 = vmatpush3.msra.mxu1 %v4680_v8 }
 0x51f   :  { %3415 = vmatprep.subr.mxu1 %v3661_v5 }
 0x520   :  { %3416 = vmatpush3.msra.mxu1 %v4689_v9 }
 0x521   :  { %3417 = vmatprep.subr.mxu1 %v3661_v5 }
 0x522   :  { %3418 = vmatpush3.msra.mxu1 %v4698_v51 }
 0x523   :  { %3419 = vmatprep.subr.mxu1 %v3661_v5 }
 0x524   :  { %3420 = vmatpush3.msra.mxu1 %v4707_v17 }
 0x525   :  { %3421 = vmatprep.subr.mxu1 %v3661_v5 }
 0x526   :  { %3422 = vmatpush3.msra.mxu1 %v4716_v20  ;;  %v5105_v20 = vld [vmem:[%s5517_s4 + $0x70] sm:$0xff] }
 0x527   :  { %3423 = vmatprep.subr.mxu1 %v3661_v5 }
 0x528   :  { %3424 = vmatpush3.msra.mxu1 %v4725_v21 }
 0x529   :  { %3425 = vmatprep.subr.mxu1 %v3661_v5 }
 0x52a   :  { %3426 = vmatpush3.msra.mxu1 %v4734_v24  ;;  %v5116_v24 = vld [vmem:[%s5517_s4 + $0x68] sm:$0xff] }
 0x52b   :  { %3427 = vmatprep.subr.mxu1 %v3661_v5 }
 0x52c   :  { %3428 = vmatpush3.msra.mxu1 %v4743_v27  ;;  %v5123_v27 = vld [vmem:[%s5517_s4 + $0x60] sm:$0xff] }
 0x52d   :  { %3429 = vmatprep.subr.mxu1 %v3661_v5 }
 0x52e   :  { %3430 = vmatpush3.msra.mxu1 %v4752_v28  ;;  %v5130_v28 = vld [vmem:[%s5517_s4 + $0x58] sm:$0xff] }
 0x52f   :  { %3431 = vmatprep.subr.mxu1 %v3661_v5 }
 0x530   :  { %3432 = vmatpush3.msra.mxu1 %v4765_v29  ;;  %v5137_v29 = vld [vmem:[%s5517_s4 + $0x50] sm:$0xff] }
 0x531   :  { %3433 = vmatprep.subr.mxu1 %v3661_v5 }
 0x532   :  { %3434 = vmatpush3.msra.mxu1 %v4774_v30  ;;  %v5144_v30 = vld [vmem:[%s5517_s4 + $0x48] sm:$0xff] }
 0x533   :  { %3435 = vmatprep.subr.mxu1 %v3661_v5 }
 0x534   :  { %3436 = vmatpush3.msra.mxu1 %v4783_v22  ;;  %v5151_v22 = vld [vmem:[%s5517_s4 + $0x40] sm:$0xff] }
 0x535   :  { %3437 = vmatprep.subr.mxu1 %v3661_v5 }
 0x536   :  { %3438 = vmatpush3.msra.mxu1 %v4792_v55  ;;  %v5158_v55 = vld [vmem:[%s5517_s4 + $0x38] sm:$0xff] }
 0x537   :  { %3477 = vmatprep.subr.mxu1 %v3661_v5 }
 0x597   :  { %v1291_v62 = vpop.f32.mrf.mxu1 }
 0x598   :  { %v1292_v25 = vadd.f32 %v4351_v6, %v1291_v62  ;;  %v5039_v6 = vld [vmem:[%s5523_s7] ss:$0 sm:$0xff] }
 0x599   :  { %v3231_v26 = vpop.f32.mrf.mxu1 }
 0x59a   :  { %v5025_v47 = vadd.f32 %v1292_v25, %v1023_v23  ;;  %v5179_v23 = vld [vmem:[%s5517_s4 + $0x20] sm:$0xff] }
 0x59c   :  { %v1296_v48 = vmax.f32 %v5025_v47, 0.0 }
 0x59e   :  { %v5028_v50 = vfloor.f32 %v1296_v48  ;;  %v2048_v48 = vld [vmem:[%s5521_s8 + $0x70] sm:$0xff] }
 0x5a0   :  { %1299 = vst [vmem:[%s5525_s10 + $0x18] sm:$0xff] %v5028_v50  ;;  %v1298_v18 = vsub.f32 %v5025_v47, %v5028_v50  ;;  %v2047_v50 = vld [vmem:[%s5521_s8 + $0x68] sm:$0xff] }
 0x5b7   :  { %v1476_v61 = vpop.f32.mrf.mxu1 }
 0x5b8   :  { %v1477_v63 = vadd.f32 %v5039_v6, %v1476_v61  ;;  %v2045_v61 = vld [vmem:[%s5521_s8 + $0x58] sm:$0xff] }
 0x5b9   :  { %v3301_v59 = vpop.f32.mrf.mxu1 }
 0x5ba   :  { %v5045_v0 = vadd.f32 %v1477_v63, %v1208_v53  ;;  %v2044_v63 = vld [vmem:[%s5521_s8 + $0x50] sm:$0xff]  ;;  %v2043_v59 = vld [vmem:[%s5521_s8 + $0x48] sm:$0xff] }
 0x5bc   :  { %v1481_v54 = vmax.f32 %v5045_v0, 0.0 }
 0x5be   :  { %v5048_v41 = vfloor.f32 %v1481_v54  ;;  %v2041_v54 = vld [vmem:[%s5521_s8 + $0x38] sm:$0xff] }
 0x5c0   :  { %3335 = vmatmul.mubr.f32.vlgmr.msra.gmra.mxu0 %v5048_v41  ;;  %v1483_v45 = vsub.f32 %v5045_v0, %v5048_v41  ;;  %v2042_v0 = vld [vmem:[%s5521_s8 + $0x40] sm:$0xff]  ;;  %v2040_v41 = vld [vmem:[%s5521_s8 + $0x30] sm:$0xff] }
 0x5c1   :  { %3373 = vmatpush3.msra.mxu0 %v4826_v33  ;;  %3404 = vmatprep.mubr.msk.f32.mxu0 %vm3662_vm0, %v3661_v5 }
 0x5c2   :  { %3374 = vmatprep.subr.mxu0 %v3661_v5 }
 0x5c3   :  { %3375 = vmatpush3.msra.mxu0 %v4832_v49 }
 0x5c4   :  { %3376 = vmatprep.subr.mxu0 %v3661_v5 }
 0x5c5   :  { %3377 = vmatpush3.msra.mxu0 %v4843_v2 }
 0x5c6   :  { %3378 = vmatprep.subr.mxu0 %v3661_v5 }
 0x5c7   :  { %3379 = vmatpush3.msra.mxu0 %v4850_v4 }
 0x5c8   :  { %3380 = vmatprep.subr.mxu0 %v3661_v5 }
 0x5c9   :  { %3381 = vmatpush3.msra.mxu0 %v4857_v7 }
 0x5ca   :  { %3382 = vmatprep.subr.mxu0 %v3661_v5 }
 0x5cb   :  { %3383 = vmatpush3.msra.mxu0 %v4864_v10 }
 0x5cc   :  { %3384 = vmatprep.subr.mxu0 %v3661_v5 }
 0x5cd   :  { %3385 = vmatpush3.msra.mxu0 %v4871_v13 }
 0x5ce   :  { %3386 = vmatprep.subr.mxu0 %v3661_v5 }
 0x5cf   :  { %3387 = vmatpush3.msra.mxu0 %v4878_v14 }
 0x5d0   :  { %3388 = vmatprep.subr.mxu0 %v3661_v5 }
 0x5d1   :  { %3389 = vmatpush3.msra.mxu0 %v4885_v35 }
 0x5d2   :  { %3390 = vmatprep.subr.mxu0 %v3661_v5 }
 0x5d3   :  { %3391 = vmatpush3.msra.mxu0 %v4892_v36 }
 0x5d4   :  { %3392 = vmatprep.subr.mxu0 %v3661_v5 }
 0x5d5   :  { %3393 = vmatpush3.msra.mxu0 %v4899_v37 }
 0x5d6   :  { %3394 = vmatprep.subr.mxu0 %v3661_v5 }
 0x5d7   :  { %3395 = vmatpush3.msra.mxu0 %v4906_v39  ;;  %v1661_v60 = vpop.f32.mrf.mxu1 }
 0x5d8   :  { %v1662_v58 = vadd.f32 %v4914_v3, %v1661_v60  ;;  %3396 = vmatprep.subr.mxu0 %v3661_v5  ;;  %v2038_v60 = vld [vmem:[%s5521_s8 + $0x20] sm:$0xff] }
 0x5d9   :  { %3397 = vmatpush3.msra.mxu0 %v4579_v34  ;;  %v3371_v8 = vpop.f32.mrf.mxu1  ;;  %v5097_v34 = vld [vmem:[%s5517_s4 + $0x78] sm:$0xff] }
 0x5da   :  { %v5084_v9 = vadd.f32 %v1662_v58, %v1393_v40  ;;  %3398 = vmatprep.subr.mxu0 %v3661_v5  ;;  %v2037_v58 = vld [vmem:[%s5521_s8 + $0x18] sm:$0xff]  ;;  %v2036_v8 = vld [vmem:[%s5521_s8 + $0x10] sm:$0xff] }
 0x5db   :  { %3399 = vmatpush3.msra.mxu0 %v4921_v16 }
 0x5dc   :  { %v1666_v51 = vmax.f32 %v5084_v9, 0.0  ;;  %3400 = vmatprep.subr.mxu0 %v3661_v5 }
 0x5dd   :  { %3401 = vmatpush3.msra.mxu0 %v4933_v56 }
 0x5de   :  { %v5091_v17 = vfloor.f32 %v1666_v51  ;;  %3402 = vmatprep.subr.mxu0 %v3661_v5  ;;  %v2034_v51 = vld [vmem:[%s5521_s8] sm:$0xff] }
 0x5df   :  { %3403 = vmatpush3.msra.mxu0 %v4941_v11 }
 0x5e0   :  { %3442 = vmatprep.subr.mxu0 %v3661_v5  ;;  %3405 = vmatmul.mubr.f32.vlgmr.msra.gmra.mxu0 %v5091_v17  ;;  %v1668_v21 = vsub.f32 %v5084_v9, %v5091_v17  ;;  %v2035_v9 = vld [vmem:[%s5521_s8 + $0x8] sm:$0xff] }
 0x5e1   :  { %3443 = vmatpush3.msra.mxu0 %v5097_v34  ;;  %3474 = vmatprep.mubr.msk.f32.mxu0 %vm3662_vm0, %v3661_v5 }
 0x5e2   :  { %3444 = vmatprep.subr.mxu0 %v3661_v5 }
 0x5e3   :  { %3445 = vmatpush3.msra.mxu0 %v5105_v20 }
 0x5e4   :  { %3446 = vmatprep.subr.mxu0 %v3661_v5 }
 0x5e5   :  { %3447 = vmatpush3.msra.mxu0 %v5116_v24 }
 0x5e6   :  { %3448 = vmatprep.subr.mxu0 %v3661_v5 }
 0x5e7   :  { %3449 = vmatpush3.msra.mxu0 %v5123_v27 }
 0x5e8   :  { %3450 = vmatprep.subr.mxu0 %v3661_v5 }
 0x5e9   :  { %3451 = vmatpush3.msra.mxu0 %v5130_v28 }
 0x5ea   :  { %3452 = vmatprep.subr.mxu0 %v3661_v5 }
 0x5eb   :  { %3453 = vmatpush3.msra.mxu0 %v5137_v29 }
 0x5ec   :  { %3454 = vmatprep.subr.mxu0 %v3661_v5 }
 0x5ed   :  { %3455 = vmatpush3.msra.mxu0 %v5144_v30 }
 0x5ee   :  { %3456 = vmatprep.subr.mxu0 %v3661_v5 }
 0x5ef   :  { %3457 = vmatpush3.msra.mxu0 %v5151_v22 }
 0x5f0   :  { %3458 = vmatprep.subr.mxu0 %v3661_v5 }
 0x5f1   :  { %3459 = vmatpush3.msra.mxu0 %v5158_v55 }
 0x5f2   :  { %3460 = vmatprep.subr.mxu0 %v3661_v5 }
 0x5f3   :  { %3461 = vmatpush3.msra.mxu0 %v5165_v15 }
 0x5f4   :  { %3462 = vmatprep.subr.mxu0 %v3661_v5 }
 0x5f5   :  { %3463 = vmatpush3.msra.mxu0 %v5172_v19 }
 0x5f6   :  { %3464 = vmatprep.subr.mxu0 %v3661_v5 }
 0x5f7   :  { %3465 = vmatpush3.msra.mxu0 %v5179_v23 }
 0x5f8   :  { %3466 = vmatprep.subr.mxu0 %v3661_v5 }
 0x5f9   :  { %3467 = vmatpush3.msra.mxu0 %v5186_v31 }
 0x5fa   :  { %3468 = vmatprep.subr.mxu0 %v3661_v5 }
 0x5fb   :  { %3469 = vmatpush3.msra.mxu0 %v4632_v42  ;;  %v5204_v42 = vld [vmem:[%s5524_s9] ss:$0 sm:$0xff] }
 0x5fc   :  { %3470 = vmatprep.subr.mxu0 %v3661_v5 }
 0x5fd   :  { %3471 = vmatpush3.msra.mxu0 %v4639_v43 }
 0x5fe   :  { %3472 = vmatprep.subr.mxu0 %v3661_v5 }
 0x5ff   :  { %3473 = vmatpush3.msra.mxu0 %v4646_v44 }
 0x600   :  { %3475 = vmatmul.mubr.f32.vlgmr.msra.gmra.mxu0 %v5534_v57  ;;  %3512 = vmatprep.subr.mxu0 %v3661_v5 }
 0x601   :  { %3544 = vmatprep.mubr.msk.f32.mxu0 %vm3662_vm0, %v3661_v5 }
 0x680   :  { %v1566_v53 = vpop.f32.mrf.mxu0 }
 0x681   :  { %v1567_v12 = vadd.f32 %v5204_v42, %v1566_v53  ;;  %v2230_v53 = vld [vmem:[%s5518_s6 + $0x68] sm:$0xff] }
 0x682   :  { %v3336_v43 = vpop.f32.mrf.mxu0 }
 0x683   :  { %v5210_v44 = vadd.f32 %v1567_v12, %v1298_v18  ;;  %v2046_v18 = vld [vmem:[%s5521_s8 + $0x60] sm:$0xff]  ;;  %v2228_v43 = vld [vmem:[%s5518_s6 + $0x58] sm:$0xff] }
 0x684   :  { %v2229_v12 = vld [vmem:[%s5518_s6 + $0x60] sm:$0xff] }
 0x685   :  { %v1571_v1 = vmax.f32 %v5210_v44, 0.0 }
 0x687   :  { %v5213_v52 = vfloor.f32 %v1571_v1  ;;  %v2226_v1 = vld [vmem:[%s5518_s6 + $0x48] sm:$0xff] }
 0x689   :  { %1574 = vst [vmem:[%s5525_s10 + $0x20] sm:$0xff] %v5213_v52  ;;  %v1573_v32 = vsub.f32 %v5210_v44, %v5213_v52  ;;  %v2227_v44 = vld [vmem:[%s5518_s6 + $0x50] sm:$0xff]  ;;  %v2225_v52 = vld [vmem:[%s5518_s6 + $0x40] sm:$0xff] }
 0x6a0   :  { %v1751_v38 = vpop.f32.mrf.mxu0 }
 0x6a1   :  { %v1752_v40 = vadd.f32 %v5039_v6, %v1751_v38  ;;  %v2223_v38 = vld [vmem:[%s5518_s6 + $0x30] sm:$0xff] }
 0x6a2   :  { %v3406_v46 = vpop.f32.mrf.mxu0 }
 0x6a3   :  { %v5225_v62 = vadd.f32 %v1752_v40, %v1483_v45  ;;  %v2039_v45 = vld [vmem:[%s5521_s8 + $0x28] sm:$0xff]  ;;  %v2221_v46 = vld [vmem:[%s5518_s6 + $0x20] sm:$0xff] }
 0x6a4   :  { %v2222_v40 = vld [vmem:[%s5518_s6 + $0x28] sm:$0xff] }
 0x6a5   :  { %v1756_v25 = vmax.f32 %v5225_v62, 0.0 }
 0x6a7   :  { %v5228_v26 = vfloor.f32 %v1756_v25 }
 0x6a9   :  { %3440 = vmatmul.mubr.f32.vlgmr.msra.gmra.mxu1 %v5228_v26  ;;  %v1758_v47 = vsub.f32 %v5225_v62, %v5228_v26  ;;  %v2219_v26 = vld [vmem:[%s5518_s6 + $0x10] sm:$0xff] }
 0x6aa   :  { %3478 = vmatpush3.msra.mxu1 %v4826_v33  ;;  %3509 = vmatprep.mubr.msk.f32.mxu1 %vm3662_vm0, %v3661_v5  ;;  %v5260_v33 = vld [vmem:[%s5518_s6 + $0x18] sm:$0xff] }
 0x6ab   :  { %3479 = vmatprep.subr.mxu1 %v3661_v5 }
 0x6ac   :  { %3480 = vmatpush3.msra.mxu1 %v4832_v49 }
 0x6ad   :  { %3481 = vmatprep.subr.mxu1 %v3661_v5 }
 0x6ae   :  { %3482 = vmatpush3.msra.mxu1 %v4843_v2 }
 0x6af   :  { %3483 = vmatprep.subr.mxu1 %v3661_v5 }
 0x6b0   :  { %3484 = vmatpush3.msra.mxu1 %v4850_v4 }
 0x6b1   :  { %3485 = vmatprep.subr.mxu1 %v3661_v5 }
 0x6b2   :  { %3486 = vmatpush3.msra.mxu1 %v4857_v7 }
 0x6b3   :  { %3487 = vmatprep.subr.mxu1 %v3661_v5 }
 0x6b4   :  { %3488 = vmatpush3.msra.mxu1 %v4864_v10 }
 0x6b5   :  { %3489 = vmatprep.subr.mxu1 %v3661_v5 }
 0x6b6   :  { %3490 = vmatpush3.msra.mxu1 %v4871_v13 }
 0x6b7   :  { %3491 = vmatprep.subr.mxu1 %v3661_v5 }
 0x6b8   :  { %3492 = vmatpush3.msra.mxu1 %v4878_v14 }
 0x6b9   :  { %3493 = vmatprep.subr.mxu1 %v3661_v5 }
 0x6ba   :  { %3494 = vmatpush3.msra.mxu1 %v4885_v35  ;;  %v2130_v35 = vld [vmem:[%s5517_s4 + $0x10] sm:$0xff] }
 0x6bb   :  { %3495 = vmatprep.subr.mxu1 %v3661_v5 }
 0x6bc   :  { %3496 = vmatpush3.msra.mxu1 %v4892_v36  ;;  %v5535_v36 = vld [vmem:[#allocation4_spill] sm:$0xff] }
 0x6bd   :  { %3497 = vmatprep.subr.mxu1 %v3661_v5 }
 0x6be   :  { %3498 = vmatpush3.msra.mxu1 %v4899_v37  ;;  %v2126_v37 = vmax.f32 %v5535_v36, 0.0 }
 0x6bf   :  { %3499 = vmatprep.subr.mxu1 %v3661_v5 }
 0x6c0   :  { %v1936_v49 = vpop.f32.mrf.mxu0  ;;  %3500 = vmatpush3.msra.mxu1 %v4906_v39  ;;  %v2129_v39 = vld [vmem:[%s5517_s4 + $0x8] sm:$0xff] }
 0x6c1   :  { %v1937_v2 = vadd.f32 %v4914_v3, %v1936_v49  ;;  %3501 = vmatprep.subr.mxu1 %v3661_v5 }
 0x6c2   :  { %v3476_v4 = vpop.f32.mrf.mxu0  ;;  %3502 = vmatpush3.msra.mxu1 %v5260_v33 }
 0x6c3   :  { %v5269_v7 = vadd.f32 %v1937_v2, %v1668_v21  ;;  %3503 = vmatprep.subr.mxu1 %v3661_v5  ;;  %v2218_v2 = vld [vmem:[%s5518_s6 + $0x8] sm:$0xff]  ;;  %v2217_v4 = vld [vmem:[%s5518_s6] sm:$0xff] }
 0x6c4   :  { %3504 = vmatpush3.msra.mxu1 %v4921_v16  ;;  %v2128_v16 = vld [vmem:[%s5517_s4] sm:$0xff] }
 0x6c5   :  { %v1941_v10 = vmax.f32 %v5269_v7, 0.0  ;;  %3505 = vmatprep.subr.mxu1 %v3661_v5 }
 0x6c6   :  { %3506 = vmatpush3.msra.mxu1 %v4933_v56  ;;  %v2127_v56 = vfloor.f32 %v2126_v37 }
 0x6c7   :  { %v5276_v13 = vfloor.f32 %v1941_v10  ;;  %3507 = vmatprep.subr.mxu1 %v3661_v5 }
 0x6c8   :  { %3508 = vmatpush3.msra.mxu1 %v4941_v11  ;;  %v2049_v11 = vld [vmem:[%s5521_s8 + $0x78] sm:$0xff] }
 0x6c9   :  { %3510 = vmatmul.mubr.f32.vlgmr.msra.gmra.mxu1 %v5276_v13  ;;  %3547 = vmatprep.subr.mxu1 %v3661_v5  ;;  %v1943_v14 = vsub.f32 %v5269_v7, %v5276_v13 }
 0x6ca   :  { %3548 = vmatpush3.msra.mxu1 %v5097_v34  ;;  %3579 = vmatprep.mubr.msk.f32.mxu1 %vm3662_vm0, %v3661_v5 }
 0x6cb   :  { %3549 = vmatprep.subr.mxu1 %v3661_v5  ;;  %3513 = vmatpush3.msra.mxu0 %v2049_v11 }
 0x6cc   :  { %3550 = vmatpush3.msra.mxu1 %v5105_v20  ;;  %3514 = vmatprep.subr.mxu0 %v3661_v5 }
 0x6cd   :  { %3551 = vmatprep.subr.mxu1 %v3661_v5  ;;  %3515 = vmatpush3.msra.mxu0 %v2048_v48 }
 0x6ce   :  { %3552 = vmatpush3.msra.mxu1 %v5116_v24  ;;  %3516 = vmatprep.subr.mxu0 %v3661_v5 }
 0x6cf   :  { %3553 = vmatprep.subr.mxu1 %v3661_v5  ;;  %3517 = vmatpush3.msra.mxu0 %v2047_v50 }
 0x6d0   :  { %3554 = vmatpush3.msra.mxu1 %v5123_v27  ;;  %3518 = vmatprep.subr.mxu0 %v3661_v5 }
 0x6d1   :  { %3555 = vmatprep.subr.mxu1 %v3661_v5  ;;  %3519 = vmatpush3.msra.mxu0 %v2046_v18 }
 0x6d2   :  { %3556 = vmatpush3.msra.mxu1 %v5130_v28  ;;  %3520 = vmatprep.subr.mxu0 %v3661_v5 }
 0x6d3   :  { %3557 = vmatprep.subr.mxu1 %v3661_v5  ;;  %3521 = vmatpush3.msra.mxu0 %v2045_v61 }
 0x6d4   :  { %3558 = vmatpush3.msra.mxu1 %v5137_v29  ;;  %3522 = vmatprep.subr.mxu0 %v3661_v5 }
 0x6d5   :  { %3559 = vmatprep.subr.mxu1 %v3661_v5  ;;  %3523 = vmatpush3.msra.mxu0 %v2044_v63 }
 0x6d6   :  { %3560 = vmatpush3.msra.mxu1 %v5144_v30  ;;  %3524 = vmatprep.subr.mxu0 %v3661_v5 }
 0x6d7   :  { %3561 = vmatprep.subr.mxu1 %v3661_v5  ;;  %3525 = vmatpush3.msra.mxu0 %v2043_v59 }
 0x6d8   :  { %3562 = vmatpush3.msra.mxu1 %v5151_v22  ;;  %3526 = vmatprep.subr.mxu0 %v3661_v5 }
 0x6d9   :  { %3563 = vmatprep.subr.mxu1 %v3661_v5  ;;  %3527 = vmatpush3.msra.mxu0 %v2042_v0 }
 0x6da   :  { %3564 = vmatpush3.msra.mxu1 %v5158_v55  ;;  %3528 = vmatprep.subr.mxu0 %v3661_v5 }
 0x6db   :  { %3565 = vmatprep.subr.mxu1 %v3661_v5  ;;  %3529 = vmatpush3.msra.mxu0 %v2041_v54 }
 0x6dc   :  { %3566 = vmatpush3.msra.mxu1 %v5165_v15  ;;  %3530 = vmatprep.subr.mxu0 %v3661_v5 }
 0x6dd   :  { %3567 = vmatprep.subr.mxu1 %v3661_v5  ;;  %3531 = vmatpush3.msra.mxu0 %v2040_v41 }
 0x6de   :  { %3568 = vmatpush3.msra.mxu1 %v5172_v19  ;;  %3532 = vmatprep.subr.mxu0 %v3661_v5 }
 0x6df   :  { %3569 = vmatprep.subr.mxu1 %v3661_v5  ;;  %3533 = vmatpush3.msra.mxu0 %v2039_v45 }
 0x6e0   :  { %3570 = vmatpush3.msra.mxu1 %v5179_v23  ;;  %3534 = vmatprep.subr.mxu0 %v3661_v5  ;;  %v2232_v23 = vld [vmem:[%s5518_s6 + $0x78] sm:$0xff] }
 0x6e1   :  { %3571 = vmatprep.subr.mxu1 %v3661_v5  ;;  %3535 = vmatpush3.msra.mxu0 %v2038_v60 }
 0x6e2   :  { %3572 = vmatpush3.msra.mxu1 %v5186_v31  ;;  %3536 = vmatprep.subr.mxu0 %v3661_v5  ;;  %v2231_v31 = vld [vmem:[%s5518_s6 + $0x70] sm:$0xff] }
 0x6e3   :  { %3573 = vmatprep.subr.mxu1 %v3661_v5  ;;  %3537 = vmatpush3.msra.mxu0 %v2037_v58 }
 0x6e4   :  { %3574 = vmatpush3.msra.mxu1 %v2130_v35  ;;  %3538 = vmatprep.subr.mxu0 %v3661_v5 }
 0x6e5   :  { %3575 = vmatprep.subr.mxu1 %v3661_v5  ;;  %3539 = vmatpush3.msra.mxu0 %v2036_v8 }
 0x6e6   :  { %3576 = vmatpush3.msra.mxu1 %v2129_v39  ;;  %3540 = vmatprep.subr.mxu0 %v3661_v5 }
 0x6e7   :  { %3577 = vmatprep.subr.mxu1 %v3661_v5  ;;  %3541 = vmatpush3.msra.mxu0 %v2035_v9 }
 0x6e8   :  { %3578 = vmatpush3.msra.mxu1 %v2128_v16  ;;  %3542 = vmatprep.subr.mxu0 %v3661_v5 }
 0x6e9   :  { %3580 = vmatmul.mubr.f32.vlgmr.msra.gmra.mxu1 %v2127_v56  ;;  %3617 = vmatprep.subr.mxu1 %v3661_v5 }
 0x6ea   :  { %3649 = vmatprep.mubr.msk.f32.mxu1 %vm3662_vm0, %v3661_v5  ;;  %3618 = vmatpush3.msra.mxu1 %v2049_v11 }
 0x6eb   :  { %3619 = vmatprep.subr.mxu1 %v3661_v5  ;;  %3543 = vmatpush3.msra.mxu0 %v2034_v51 }
 0x6ec   :  { %3620 = vmatpush3.msra.mxu1 %v2048_v48  ;;  %3582 = vmatprep.subr.mxu0 %v3661_v5 }
 0x6ed   :  { %3621 = vmatprep.subr.mxu1 %v3661_v5 }
 0x6ee   :  { %3622 = vmatpush3.msra.mxu1 %v2047_v50 }
 0x6ef   :  { %3623 = vmatprep.subr.mxu1 %v3661_v5 }
 0x6f0   :  { %3624 = vmatpush3.msra.mxu1 %v2046_v18 }
 0x6f1   :  { %3625 = vmatprep.subr.mxu1 %v3661_v5 }
 0x6f2   :  { %3626 = vmatpush3.msra.mxu1 %v2045_v61 }
 0x6f3   :  { %3627 = vmatprep.subr.mxu1 %v3661_v5 }
 0x6f4   :  { %3628 = vmatpush3.msra.mxu1 %v2044_v63 }
 0x6f5   :  { %3629 = vmatprep.subr.mxu1 %v3661_v5 }
 0x6f6   :  { %3630 = vmatpush3.msra.mxu1 %v2043_v59 }
 0x6f7   :  { %3631 = vmatprep.subr.mxu1 %v3661_v5 }
 0x6f8   :  { %3632 = vmatpush3.msra.mxu1 %v2042_v0 }
 0x6f9   :  { %3633 = vmatprep.subr.mxu1 %v3661_v5 }
 0x6fa   :  { %3634 = vmatpush3.msra.mxu1 %v2041_v54 }
 0x6fb   :  { %3635 = vmatprep.subr.mxu1 %v3661_v5 }
 0x6fc   :  { %3636 = vmatpush3.msra.mxu1 %v2040_v41 }
 0x6fd   :  { %3637 = vmatprep.subr.mxu1 %v3661_v5 }
 0x6fe   :  { %3638 = vmatpush3.msra.mxu1 %v2039_v45 }
 0x6ff   :  { %3639 = vmatprep.subr.mxu1 %v3661_v5 }
 0x700   :  { %3640 = vmatpush3.msra.mxu1 %v2038_v60 }
 0x701   :  { %3641 = vmatprep.subr.mxu1 %v3661_v5 }
 0x702   :  { %3642 = vmatpush3.msra.mxu1 %v2037_v58 }
 0x703   :  { %3643 = vmatprep.subr.mxu1 %v3661_v5 }
 0x704   :  { %3644 = vmatpush3.msra.mxu1 %v2036_v8 }
 0x705   :  { %3645 = vmatprep.subr.mxu1 %v3661_v5 }
 0x706   :  { %3646 = vmatpush3.msra.mxu1 %v2035_v9 }
 0x707   :  { %3647 = vmatprep.subr.mxu1 %v3661_v5 }
 0x708   :  { %3648 = vmatpush3.msra.mxu1 %v2034_v51 }
 0x769   :  { %v1841_v17 = vpop.f32.mrf.mxu1 }
 0x76a   :  { %v1842_v34 = vadd.f32 %v5204_v42, %v1841_v17 }
 0x76b   :  { %v3441_v20 = vpop.f32.mrf.mxu1 }
 0x76c   :  { %v5410_v21 = vadd.f32 %v1842_v34, %v1573_v32  ;;  %v2224_v32 = vld [vmem:[%s5518_s6 + $0x38] sm:$0xff] }
 0x76e   :  { %v1846_v24 = vmax.f32 %v5410_v21, 0.0 }
 0x770   :  { %v5413_v27 = vfloor.f32 %v1846_v24 }
 0x772   :  { %1849 = vst [vmem:[%s5525_s10 + $0x28] sm:$0xff] %v5413_v27  ;;  %v1848_v28 = vsub.f32 %v5410_v21, %v5413_v27 }
 0x789   :  { %v2026_v29 = vpop.f32.mrf.mxu1 }
 0x78a   :  { %v2027_v30 = vadd.f32 %v5039_v6, %v2026_v29 }
 0x78b   :  { %v3511_v22 = vpop.f32.mrf.mxu1 }
 0x78c   :  { %v5425_v55 = vadd.f32 %v2027_v30, %v1758_v47 }
 0x78e   :  { %v2031_v15 = vmax.f32 %v5425_v55, 0.0 }
 0x790   :  { %v5428_v19 = vfloor.f32 %v2031_v15 }
 0x792   :  { %3545 = vmatmul.mubr.f32.vlgmr.msra.gmra.mxu0 %v5428_v19  ;;  %v2033_v57 = vsub.f32 %v5425_v55, %v5428_v19 }
 0x793   :  { %3583 = vmatpush3.msra.mxu0 %v2232_v23  ;;  %3614 = vmatprep.mubr.msk.f32.mxu0 %vm3662_vm0, %v3661_v5 }
 0x794   :  { %3584 = vmatprep.subr.mxu0 %v3661_v5 }
 0x795   :  { %3585 = vmatpush3.msra.mxu0 %v2231_v31 }
 0x796   :  { %3586 = vmatprep.subr.mxu0 %v3661_v5 }
 0x797   :  { %3587 = vmatpush3.msra.mxu0 %v2230_v53 }
 0x798   :  { %3588 = vmatprep.subr.mxu0 %v3661_v5 }
 0x799   :  { %3589 = vmatpush3.msra.mxu0 %v2229_v12 }
 0x79a   :  { %3590 = vmatprep.subr.mxu0 %v3661_v5 }
 0x79b   :  { %3591 = vmatpush3.msra.mxu0 %v2228_v43 }
 0x79c   :  { %3592 = vmatprep.subr.mxu0 %v3661_v5 }
 0x79d   :  { %3593 = vmatpush3.msra.mxu0 %v2227_v44 }
 0x79e   :  { %3594 = vmatprep.subr.mxu0 %v3661_v5 }
 0x79f   :  { %3595 = vmatpush3.msra.mxu0 %v2226_v1 }
 0x7a0   :  { %3596 = vmatprep.subr.mxu0 %v3661_v5 }
 0x7a1   :  { %3597 = vmatpush3.msra.mxu0 %v2225_v52 }
 0x7a2   :  { %3598 = vmatprep.subr.mxu0 %v3661_v5 }
 0x7a3   :  { %3599 = vmatpush3.msra.mxu0 %v2224_v32 }
 0x7a4   :  { %3600 = vmatprep.subr.mxu0 %v3661_v5 }
 0x7a5   :  { %3601 = vmatpush3.msra.mxu0 %v2223_v38 }
 0x7a6   :  { %3602 = vmatprep.subr.mxu0 %v3661_v5 }
 0x7a7   :  { %3603 = vmatpush3.msra.mxu0 %v2222_v40 }
 0x7a8   :  { %3604 = vmatprep.subr.mxu0 %v3661_v5 }
 0x7a9   :  { %v2210_v62 = vpop.f32.mrf.mxu1  ;;  %3605 = vmatpush3.msra.mxu0 %v2221_v46 }
 0x7aa   :  { %v2211_v25 = vadd.f32 %v4914_v3, %v2210_v62  ;;  %3606 = vmatprep.subr.mxu0 %v3661_v5 }
 0x7ab   :  { %v3581_v47 = vpop.f32.mrf.mxu1  ;;  %3607 = vmatpush3.msra.mxu0 %v5260_v33 }
 0x7ac   :  { %v2214_v49 = vadd.f32 %v2211_v25, %v1943_v14  ;;  %3608 = vmatprep.subr.mxu0 %v3661_v5 }
 0x7ad   :  { %3609 = vmatpush3.msra.mxu0 %v2219_v26 }
 0x7ae   :  { %v2215_v3 = vmax.f32 %v2214_v49, 0.0  ;;  %3610 = vmatprep.subr.mxu0 %v3661_v5 }
 0x7af   :  { %3611 = vmatpush3.msra.mxu0 %v2218_v2 }
 0x7b0   :  { %v2216_v33 = vfloor.f32 %v2215_v3  ;;  %3612 = vmatprep.subr.mxu0 %v3661_v5 }
 0x7b1   :  { %3613 = vmatpush3.msra.mxu0 %v2217_v4 }
 0x7b2   :  { %3615 = vmatmul.mubr.f32.vlgmr.msra.gmra.mxu0 %v2216_v33 }
 0x852   :  { %v2116_v7 = vpop.f32.mrf.mxu0 }
 0x853   :  { %v2117_v10 = vadd.f32 %v5204_v42, %v2116_v7 }
 0x854   :  { %v3546_v13 = vpop.f32.mrf.mxu0 }
 0x855   :  { %v2120_v14 = vadd.f32 %v2117_v10, %v1848_v28 }
 0x857   :  { %v2121_v35 = vmax.f32 %v2120_v14, 0.0 }
 0x859   :  { %v2122_v36 = vfloor.f32 %v2121_v35 }
 0x85b   :  { %2124 = vst [vmem:[%s5525_s10 + $0x30] sm:$0xff] %v2122_v36  ;;  %v2123_v37 = vsub.f32 %v2120_v14, %v2122_v36 }
 0x872   :  { %v2299_v39 = vpop.f32.mrf.mxu0 }
 0x873   :  { %v2300_v5 = vadd.f32 %v5039_v6, %v2299_v39 }
 0x874   :  { %v3616_v16 = vpop.f32.mrf.mxu0 }
 0x875   :  { %v2303_v56 = vadd.f32 %v2300_v5, %v2033_v57 }
 0x877   :  { %v2304_v11 = vmax.f32 %v2303_v56, 0.0 }
 0x879   :  { %v2305_v48 = vfloor.f32 %v2304_v11 }
 0x87b   :  { %3650 = vmatmul.mubr.f32.vlgmr.msra.gmra.mxu1 %v2305_v48 }
 0x93b   :  { %v2388_v50 = vpop.f32.mrf.mxu1 }
 0x93c   :  { %v2389_v18 = vadd.f32 %v5204_v42, %v2388_v50 }
 0x93d   :  { %v3651_v61 = vpop.f32.mrf.mxu1 }
 0x93e   :  { %v2392_v63 = vadd.f32 %v2389_v18, %v2123_v37 }
 0x940   :  { %v2393_v59 = vmax.f32 %v2392_v63, 0.0 }
 0x942   :  { %v2394_v0 = vfloor.f32 %v2393_v59 }
 0x944   :  { %2395 = vst [vmem:[%s5525_s10 + $0x38] sm:$0xff] %v2394_v0 }

</bundles_post_ra>
